<compile_context>
chip_gen: v7x
topology: tpu7x:2x2x1
jax: 0.10.0
libtpu: 0.0.40
codegen_flags: <defaults>
</compile_context>

<pallas_src>
import math
import jax
import jax.numpy as jnp
from jax.experimental import pallas as pl
from jax.experimental.pallas import tpu as pltpu

# ---- tiny "gpt-nano" config ---------------------------------------------------
N_LAYER = 3
N_HEAD = 3
N_EMBD = 48
BLOCK_SIZE = 16
VOCAB = 128
LN_EPS = 1e-5


# ---- in-kernel helpers --------------------------------------------------------
def _new_gelu(x):
    # 0.5*x*(1+tanh(sqrt(2/pi)*(x + 0.044715*x^3)))  -- NewGELU from minGPT
    return 0.5 * x * (1.0 + jnp.tanh(math.sqrt(2.0 / math.pi) * (x + 0.044715 * x * x * x)))


def _layernorm(x, w, b):
    mu = jnp.mean(x, axis=-1, keepdims=True)
    var = jnp.mean((x - mu) ** 2, axis=-1, keepdims=True)
    return (x - mu) * jax.lax.rsqrt(var + LN_EPS) * w + b


# ---- fused GPT kernel: embedding + all layers + final LN + LM head -------------
def gpt_fused_kernel(idx_ref, wte_ref, wpe_ref,
                     wqkv_ref, bqkv_ref, wproj_ref, lnvec_ref,
                     wfc_ref, bfc_ref, wfc2_ref,
                     lnf_ref, whead_ref,
                     logits_ref):
    """Forward for one batch slab of N = Bt*T tokens (rows are b-major, t-minor).

    Weight layouts (pre-packed host-side, layer axis L leading):
      wqkv  : (L, C, 3C)  bf16, columns [q | k | v], 1/sqrt(D) folded into q cols
      bqkv  : (L, 1, 3C)  f32
      wproj : (L, C, C)   bf16  (rows head-major, as in torch c_proj)
      lnvec : (L, 6, C)   f32   rows = [ln1w, ln1b, ln2w, ln2b, b_proj, b_fc2]
      wfc   : (L, C, 4C)  bf16 ;  bfc : (L, 1, 4C) f32 ;  wfc2 : (L, 4C, C) bf16
      lnf   : (2, C) f32 ;  whead : (C, V) bf16 ;  wte : (V, C) f32 ; wpe : (T, C) f32
    """
    N = idx_ref.shape[0]                # Bt*T rows in this block
    V, C = wte_ref.shape
    T = wpe_ref.shape[0]
    Bt = N // T
    H = N_HEAD
    D = C // H

    # ---- token embedding as exact one-hot matmul (V=128 lane-dense) + pos add
    idx = idx_ref[...]                                                   # (N, 1) i32
    onehot = (idx == jax.lax.broadcasted_iota(jnp.int32, (N, V), 1)).astype(jnp.float32)
    tok = jnp.dot(onehot, wte_ref[...], preferred_element_type=jnp.float32)   # (N, C)
    x = (tok.reshape(Bt, T, C) + wpe_ref[...]).reshape(N, C)             # embd drop = id

    # ---- additive causal bias, computed once (reused every layer) --------------
    row = jax.lax.broadcasted_iota(jnp.int32, (T, T), 0)
    col = jax.lax.broadcasted_iota(jnp.int32, (T, T), 1)
    mask_bias = jnp.where(col <= row, 0.0, -1e30).astype(jnp.float32)    # (T, T)

    for l in range(N_LAYER):            # static unroll, L = 3
        lv = lnvec_ref[l]                                                # (6, C) f32

        # ---- causal self-attention ------------------------------------------
        xn = _layernorm(x, lv[0:1], lv[1:2])                             # (N, C) f32
        qkv = jnp.dot(xn.astype(jnp.bfloat16), wqkv_ref[l],
                      preferred_element_type=jnp.float32) + bqkv_ref[l]  # (N, 3C)

        def split_heads(part):
            # (N, C) lane block -> (G=Bt*H, T, D), heads stacked head-major on axis 0
            return jnp.concatenate(
                [qkv[:, part * C + h * D: part * C + (h + 1) * D].reshape(Bt, T, D)
                 for h in range(H)], axis=0)

        q = split_heads(0)                                               # (G, T, D)
        k = split_heads(1)
        v = split_heads(2)

        att = jnp.einsum('gtd,gsd->gts',
                         q.astype(jnp.bfloat16), k.astype(jnp.bfloat16),
                         preferred_element_type=jnp.float32)             # (G, T, T)
        att = att + mask_bias
        att = att - jnp.max(att, axis=-1, keepdims=True)
        p = jnp.exp(att)
        p = p * pl.reciprocal(jnp.sum(p, axis=-1, keepdims=True), approx=True)

        yh = jnp.einsum('gts,gsd->gtd',
                        p.astype(jnp.bfloat16), v.astype(jnp.bfloat16),
                        preferred_element_type=jnp.float32)              # (G, T, D)
        # merge heads back onto lanes (head-major order matches wproj rows)
        ycat = jnp.concatenate(
            [yh[h * Bt:(h + 1) * Bt].reshape(N, D) for h in range(H)], axis=-1)  # (N, C)
        y = jnp.dot(ycat.astype(jnp.bfloat16), wproj_ref[l],
                    preferred_element_type=jnp.float32) + lv[4:5]        # (N, C)
        x = x + y                                                        # residual

        # ---- MLP ---------------------------------------------------------------
        xn2 = _layernorm(x, lv[2:3], lv[3:4])
        hdn = jnp.dot(xn2.astype(jnp.bfloat16), wfc_ref[l],
                      preferred_element_type=jnp.float32) + bfc_ref[l]   # (N, 4C)
        hdn = _new_gelu(hdn)
        x = x + jnp.dot(hdn.astype(jnp.bfloat16), wfc2_ref[l],
                        preferred_element_type=jnp.float32) + lv[5:6]

    # ---- final LayerNorm + (bias-free) LM head; logits lane-dense (V=128) ------
    lnf = lnf_ref[...]
    xf = _layernorm(x, lnf[0:1], lnf[1:2])
    logits_ref[...] = jnp.dot(xf.astype(jnp.bfloat16), whead_ref[...],
                              preferred_element_type=jnp.float32)


# ---- pallas_call wrapper ------------------------------------------------------
_WEIGHT_ORDER = ("wte", "wpe_t", "wqkv", "bqkv", "wproj", "lnvec",
                 "wfc", "bfc", "wfc2", "lnf", "whead")


def _const_spec(a):
    # whole-array block, constant across the grid -> loaded once, stays resident
    nd = a.ndim
    return pl.BlockSpec(a.shape, lambda g, _nd=nd: (0,) * _nd)


def gpt_forward(idx, kp, *, grid_points=None):
    """(B, T) int32 token ids -> (B, T, VOCAB) float32 logits."""
    B, T = idx.shape
    assert T <= BLOCK_SIZE
    C, V = N_EMBD, VOCAB

    if grid_points is None:
        # Default to 2 grid points so v7x's 2 TensorCores both get work; on
        # v5e/v6e pass grid_points=1 (single TC) for minimum grid overhead.
        grid_points = 2 if (B % 2 == 0 and ((B // 2) * T) % 8 == 0) else 1
    assert B % grid_points == 0
    Bt = B // grid_points
    N = Bt * T
    assert grid_points == 1 or N % 8 == 0   # sublane-tile alignment for the blocked axis

    idx2 = idx.reshape(B * T, 1).astype(jnp.int32)
    kp = dict(kp)
    kp["wpe_t"] = kp["wpe"][:T]
    weights = [kp[n] for n in _WEIGHT_ORDER]

    logits2 = pl.pallas_call(
        gpt_fused_kernel,
        out_shape=jax.ShapeDtypeStruct((B * T, V), jnp.float32),
        grid=(grid_points,),
        in_specs=[pl.BlockSpec((N, 1), lambda g: (g, 0))]
                 + [_const_spec(w) for w in weights],
        out_specs=pl.BlockSpec((N, V), lambda g: (g, 0)),
        compiler_params=pltpu.CompilerParams(
            dimension_semantics=("parallel",),        # shards batch over v7x's 2 TCs
            vmem_limit_bytes=32 * 1024 * 1024),       # <=32 MiB: safe on v5e/v6e/v7x
    )(idx2, *weights)
    return logits2.reshape(B, T, V)


# ---- host-side weight re-packing for the kernel -------------------------------
def prep_kernel_params(p):
    """Fold 1/sqrt(D) into the Q columns, pack per-layer weights into a handful of
    stacked arrays (bf16 matmul planes, f32 LN/bias slab)."""
    C, H, D = N_EMBD, N_HEAD, N_EMBD // N_HEAD
    scale = 1.0 / math.sqrt(D)
    colscale = jnp.concatenate([jnp.full((C,), scale, jnp.float32),
                                jnp.ones((2 * C,), jnp.float32)])      # scale only q cols

    wqkv, bqkv, wproj, lnvec, wfc, bfc, wfc2 = [], [], [], [], [], [], []
    for blk in p["blocks"]:
        wqkv.append(blk["w_attn"] * colscale[None, :])                 # (C, 3C)
        bqkv.append((blk["b_attn"] * colscale).reshape(1, 3 * C))
        wproj.append(blk["w_proj"])                                    # (C, C)
        lnvec.append(jnp.stack([blk["ln1_w"], blk["ln1_b"],
                                blk["ln2_w"], blk["ln2_b"],
                                blk["b_proj"], blk["b_fc2"]], axis=0))  # (6, C)
        wfc.append(blk["w_fc"])
        bfc.append(blk["b_fc"].reshape(1, 4 * C))
        wfc2.append(blk["w_fc2"])

    return {
        "wte": p["wte"].astype(jnp.float32),
        "wpe": p["wpe"].astype(jnp.float32),
        "wqkv": jnp.stack(wqkv).astype(jnp.bfloat16),
        "bqkv": jnp.stack(bqkv).astype(jnp.float32),
        "wproj": jnp.stack(wproj).astype(jnp.bfloat16),
        "lnvec": jnp.stack(lnvec).astype(jnp.float32),
        "wfc": jnp.stack(wfc).astype(jnp.bfloat16),
        "bfc": jnp.stack(bfc).astype(jnp.float32),
        "wfc2": jnp.stack(wfc2).astype(jnp.bfloat16),
        "lnf": jnp.stack([p["lnf_w"], p["lnf_b"]], axis=0).astype(jnp.float32),
        "whead": p["w_head"].astype(jnp.bfloat16),
    }


# ---- deterministic parameter init (matches torch init distributions) ----------
def init_params(key):
    std = 0.02
    proj_std = 0.02 / math.sqrt(2 * N_LAYER)   # c_proj.weight special-case init
    C, V = N_EMBD, VOCAB
    keys = jax.random.split(key, 3 + 4 * N_LAYER)
    ki = iter(keys)
    params = {
        "wte": std * jax.random.normal(next(ki), (V, C), jnp.float32),
        "wpe": std * jax.random.normal(next(ki), (BLOCK_SIZE, C), jnp.float32),
        "lnf_w": jnp.ones((C,), jnp.float32),
        "lnf_b": jnp.zeros((C,), jnp.float32),
        "w_head": std * jax.random.normal(next(ki), (C, V), jnp.float32),
        "blocks": [],
    }
    for _ in range(N_LAYER):
        blk = {
            "ln1_w": jnp.ones((C,), jnp.float32), "ln1_b": jnp.zeros((C,), jnp.float32),
            "w_attn": std * jax.random.normal(next(ki), (C, 3 * C), jnp.float32),
            "b_attn": jnp.zeros((3 * C,), jnp.float32),
            "w_proj": proj_std * jax.random.normal(next(ki), (C, C), jnp.float32),
            "b_proj": jnp.zeros((C,), jnp.float32),
            "ln2_w": jnp.ones((C,), jnp.float32), "ln2_b": jnp.zeros((C,), jnp.float32),
            "w_fc": std * jax.random.normal(next(ki), (C, 4 * C), jnp.float32),
            "b_fc": jnp.zeros((4 * C,), jnp.float32),
            "w_fc2": proj_std * jax.random.normal(next(ki), (4 * C, C), jnp.float32),
            "b_fc2": jnp.zeros((C,), jnp.float32),
        }
        params["blocks"].append(blk)
    return params


# ---- pure-JAX reference (torch-layout params, for a sanity check) --------------
def _ref_forward(idx, params):
    hp = jax.lax.Precision.HIGHEST
    T, C, H, D = idx.shape[1], N_EMBD, N_HEAD, N_EMBD // N_HEAD
    x = jnp.take(params["wte"], idx, axis=0) + params["wpe"][:T][None]
    causal = jnp.tril(jnp.ones((T, T), bool))
    for p in params["blocks"]:
        xn = _layernorm(x, p["ln1_w"], p["ln1_b"])
        qkv = jnp.dot(xn, p["w_attn"], precision=hp) + p["b_attn"]
        q, k, v = jnp.split(qkv, 3, axis=-1)
        q = q.reshape(-1, T, H, D).transpose(0, 2, 1, 3)
        k = k.reshape(-1, T, H, D).transpose(0, 2, 1, 3)
        v = v.reshape(-1, T, H, D).transpose(0, 2, 1, 3)
        att = jnp.einsum("bhqd,bhkd->bhqk", q, k, precision=hp) / math.sqrt(D)
        att = jnp.where(causal, att, -jnp.inf)
        att = jax.nn.softmax(att, axis=-1)
        y = jnp.einsum("bhqk,bhkd->bhqd", att, v, precision=hp)
        y = y.transpose(0, 2, 1, 3).reshape(-1, T, C)
        x = x + jnp.dot(y, p["w_proj"], precision=hp) + p["b_proj"]
        xn2 = _layernorm(x, p["ln2_w"], p["ln2_b"])
        h = _new_gelu(jnp.dot(xn2, p["w_fc"], precision=hp) + p["b_fc"])
        x = x + jnp.dot(h, p["w_fc2"], precision=hp) + p["b_fc2"]
    x = _layernorm(x, params["lnf_w"], params["lnf_b"])
    return jnp.dot(x, params["w_head"], precision=hp)


if __name__ == "__main__":
    key = jax.random.PRNGKey(0)
    pkey, ikey = jax.random.split(key)
    params = init_params(pkey)
    kparams = prep_kernel_params(params)

    B, T = 2, 8
    idx = jax.random.randint(ikey, (B, T), 0, VOCAB, dtype=jnp.int32)

    logits = gpt_forward(idx, kparams)
    logits = jax.block_until_ready(logits)
    assert logits.shape == (B, T, VOCAB) and logits.dtype == jnp.float32

    ref = _ref_forward(idx, params)
    assert bool(jnp.all(jnp.isfinite(logits)))
    assert bool(jnp.allclose(logits, ref, atol=2e-2, rtol=2e-2)), "mismatch vs reference"

    print("KERNEL_OK")
</pallas_src>

<mosaic_0001>
module attributes {stable_mosaic.version = 11 : i64} {
  func.func @gpt_fused_kernel(%arg0: i32, %arg1: memref<8x1xi32, #tpu.memory_space<vmem>>, %arg2: memref<128x48xf32, #tpu.memory_space<vmem>>, %arg3: memref<8x48xf32, #tpu.memory_space<vmem>>, %arg4: memref<3x48x144xbf16, #tpu.memory_space<vmem>>, %arg5: memref<3x1x144xf32, #tpu.memory_space<vmem>>, %arg6: memref<3x48x48xbf16, #tpu.memory_space<vmem>>, %arg7: memref<3x6x48xf32, #tpu.memory_space<vmem>>, %arg8: memref<3x48x192xbf16, #tpu.memory_space<vmem>>, %arg9: memref<3x1x192xf32, #tpu.memory_space<vmem>>, %arg10: memref<3x192x48xbf16, #tpu.memory_space<vmem>>, %arg11: memref<2x48xf32, #tpu.memory_space<vmem>>, %arg12: memref<48x128xbf16, #tpu.memory_space<vmem>>, %arg13: memref<8x128xf32, #tpu.memory_space<vmem>>) attributes {dimension_semantics = [#tpu.dimension_semantics<parallel>], iteration_bounds = array<i64: 2>, scalar_prefetch = 0 : i64, scratch_operands = 0 : i64, tpu.core_type = #tpu.core_type<tc>, window_params = [{transform_indices = @transform_0, window_bounds = array<i64: 8, 1>}, {pipeline_mode = #tpu.pipeline_mode<synchronous>, transform_indices = @transform_1, window_bounds = array<i64: 128, 48>}, {pipeline_mode = #tpu.pipeline_mode<synchronous>, transform_indices = @transform_2, window_bounds = array<i64: 8, 48>}, {pipeline_mode = #tpu.pipeline_mode<synchronous>, transform_indices = @transform_3, window_bounds = array<i64: 3, 48, 144>}, {pipeline_mode = #tpu.pipeline_mode<synchronous>, transform_indices = @transform_4, window_bounds = array<i64: 3, 1, 144>}, {pipeline_mode = #tpu.pipeline_mode<synchronous>, transform_indices = @transform_5, window_bounds = array<i64: 3, 48, 48>}, {pipeline_mode = #tpu.pipeline_mode<synchronous>, transform_indices = @transform_6, window_bounds = array<i64: 3, 6, 48>}, {pipeline_mode = #tpu.pipeline_mode<synchronous>, transform_indices = @transform_7, window_bounds = array<i64: 3, 48, 192>}, {pipeline_mode = #tpu.pipeline_mode<synchronous>, transform_indices = @transform_8, window_bounds = array<i64: 3, 1, 192>}, {pipeline_mode = #tpu.pipeline_mode<synchronous>, transform_indices = @transform_9, window_bounds = array<i64: 3, 192, 48>}, {pipeline_mode = #tpu.pipeline_mode<synchronous>, transform_indices = @transform_10, window_bounds = array<i64: 2, 48>}, {pipeline_mode = #tpu.pipeline_mode<synchronous>, transform_indices = @transform_11, window_bounds = array<i64: 48, 128>}, {transform_indices = @transform_12, window_bounds = array<i64: 8, 128>}]} {
    %c0 = arith.constant 0 : index
    %c0_0 = arith.constant 0 : index
    %0 = vector.load %arg1[%c0, %c0_0] : memref<8x1xi32, #tpu.memory_space<vmem>>, vector<8x1xi32>
    %1 = tpu.iota {dimensions = array<i32: 1>} : vector<8x128xi32>
    %2 = vector.broadcast %0 : vector<8x1xi32> to vector<8x128xi32>
    %3 = arith.cmpi eq, %2, %1 : vector<8x128xi32>
    %4 = arith.extui %3 : vector<8x128xi1> to vector<8x128xi32>
    %5 = arith.sitofp %4 : vector<8x128xi32> to vector<8x128xf32>
    %c0_1 = arith.constant 0 : index
    %c0_2 = arith.constant 0 : index
    %6 = vector.load %arg2[%c0_1, %c0_2] : memref<128x48xf32, #tpu.memory_space<vmem>>, vector<128x48xf32>
    %cst = arith.constant dense<0.000000e+00> : vector<8x48xf32>
    %7 = tpu.matmul %5, %6, %cst {dimension_numbers = #tpu.dot_dimension_numbers<[1], [0], [0], [1], [0, 0, 1, 1], [], []>} : vector<8x128xf32>, vector<128x48xf32>, vector<8x48xf32> -> vector<8x48xf32>
    %8 = vector.shape_cast %7 : vector<8x48xf32> to vector<1x8x48xf32>
    %c0_3 = arith.constant 0 : index
    %c0_4 = arith.constant 0 : index
    %9 = vector.load %arg3[%c0_3, %c0_4] : memref<8x48xf32, #tpu.memory_space<vmem>>, vector<8x48xf32>
    %10 = vector.shape_cast %9 : vector<8x48xf32> to vector<1x8x48xf32>
    %11 = arith.addf %8, %10 : vector<1x8x48xf32>
    %12 = vector.shape_cast %11 : vector<1x8x48xf32> to vector<8x48xf32>
    %13 = tpu.iota {dimensions = array<i32: 0>} : vector<8x8xi32>
    %14 = tpu.iota {dimensions = array<i32: 1>} : vector<8x8xi32>
    %15 = arith.cmpi sle, %14, %13 : vector<8x8xi32>
    %cst_5 = arith.constant 0.000000e+00 : f32
    %cst_6 = arith.constant -1.000000e+30 : f32
    %16 = vector.broadcast %cst_5 : f32 to vector<8x8xf32>
    %17 = vector.broadcast %cst_6 : f32 to vector<8x8xf32>
    %18 = arith.select %15, %16, %17 : vector<8x8xi1>, vector<8x8xf32>
    %c0_7 = arith.constant 0 : index
    %c0_8 = arith.constant 0 : index
    %c0_9 = arith.constant 0 : index
    %19 = vector.load %arg7[%c0_7, %c0_8, %c0_9] : memref<3x6x48xf32, #tpu.memory_space<vmem>>, vector<1x6x48xf32>
    %20 = vector.shape_cast %19 : vector<1x6x48xf32> to vector<6x48xf32>
    %21 = vector.extract_strided_slice %20 {offsets = [0, 0], sizes = [1, 48], strides = [1, 1]} : vector<6x48xf32> to vector<1x48xf32>
    %22 = vector.extract_strided_slice %20 {offsets = [1, 0], sizes = [1, 48], strides = [1, 1]} : vector<6x48xf32> to vector<1x48xf32>
    %cst_10 = arith.constant dense<0.000000e+00> : vector<8xf32>
    %23 = vector.multi_reduction <add>, %12, %cst_10 [1] : vector<8x48xf32> to vector<8xf32>
    %24 = vector.shape_cast %23 : vector<8xf32> to vector<8x1xf32>
    %cst_11 = arith.constant 4.800000e+01 : f32
    %25 = vector.broadcast %cst_11 : f32 to vector<8x1xf32>
    %26 = arith.divf %24, %25 : vector<8x1xf32>
    %27 = vector.broadcast %26 : vector<8x1xf32> to vector<8x48xf32>
    %28 = arith.subf %12, %27 : vector<8x48xf32>
    %29 = arith.mulf %28, %28 : vector<8x48xf32>
    %cst_12 = arith.constant dense<0.000000e+00> : vector<8xf32>
    %30 = vector.multi_reduction <add>, %29, %cst_12 [1] : vector<8x48xf32> to vector<8xf32>
    %31 = vector.shape_cast %30 : vector<8xf32> to vector<8x1xf32>
    %cst_13 = arith.constant 4.800000e+01 : f32
    %32 = vector.broadcast %cst_13 : f32 to vector<8x1xf32>
    %33 = arith.divf %31, %32 : vector<8x1xf32>
    %34 = vector.broadcast %26 : vector<8x1xf32> to vector<8x48xf32>
    %35 = arith.subf %12, %34 : vector<8x48xf32>
    %cst_14 = arith.constant 9.99999974E-6 : f32
    %36 = vector.broadcast %cst_14 : f32 to vector<8x1xf32>
    %37 = arith.addf %33, %36 : vector<8x1xf32>
    %38 = math.rsqrt %37 : vector<8x1xf32>
    %39 = vector.broadcast %38 : vector<8x1xf32> to vector<8x48xf32>
    %40 = arith.mulf %35, %39 : vector<8x48xf32>
    %41 = vector.broadcast %21 : vector<1x48xf32> to vector<8x48xf32>
    %42 = arith.mulf %40, %41 : vector<8x48xf32>
    %43 = vector.broadcast %22 : vector<1x48xf32> to vector<8x48xf32>
    %44 = arith.addf %42, %43 : vector<8x48xf32>
    %45 = arith.truncf %44 : vector<8x48xf32> to vector<8x48xbf16>
    %c0_15 = arith.constant 0 : index
    %c0_16 = arith.constant 0 : index
    %c0_17 = arith.constant 0 : index
    %46 = vector.load %arg4[%c0_15, %c0_16, %c0_17] : memref<3x48x144xbf16, #tpu.memory_space<vmem>>, vector<1x48x144xbf16>
    %47 = vector.shape_cast %46 : vector<1x48x144xbf16> to vector<48x144xbf16>
    %cst_18 = arith.constant dense<0.000000e+00> : vector<8x144xf32>
    %48 = tpu.matmul %45, %47, %cst_18 {dimension_numbers = #tpu.dot_dimension_numbers<[1], [0], [0], [1], [0, 0, 1, 1], [], []>} : vector<8x48xbf16>, vector<48x144xbf16>, vector<8x144xf32> -> vector<8x144xf32>
    %c0_19 = arith.constant 0 : index
    %c0_20 = arith.constant 0 : index
    %c0_21 = arith.constant 0 : index
    %49 = vector.load %arg5[%c0_19, %c0_20, %c0_21] : memref<3x1x144xf32, #tpu.memory_space<vmem>>, vector<1x1x144xf32>
    %50 = vector.shape_cast %49 : vector<1x1x144xf32> to vector<1x144xf32>
    %51 = vector.broadcast %50 : vector<1x144xf32> to vector<8x144xf32>
    %52 = arith.addf %48, %51 : vector<8x144xf32>
    %53 = vector.extract_strided_slice %52 {offsets = [0, 0], sizes = [8, 16], strides = [1, 1]} : vector<8x144xf32> to vector<8x16xf32>
    %54 = vector.shape_cast %53 : vector<8x16xf32> to vector<1x8x16xf32>
    %55 = vector.extract_strided_slice %52 {offsets = [0, 16], sizes = [8, 16], strides = [1, 1]} : vector<8x144xf32> to vector<8x16xf32>
    %56 = vector.shape_cast %55 : vector<8x16xf32> to vector<1x8x16xf32>
    %57 = vector.extract_strided_slice %52 {offsets = [0, 32], sizes = [8, 16], strides = [1, 1]} : vector<8x144xf32> to vector<8x16xf32>
    %58 = vector.shape_cast %57 : vector<8x16xf32> to vector<1x8x16xf32>
    %59 = tpu.concatenate %54, %56, %58 in 0 : vector<1x8x16xf32>, vector<1x8x16xf32>, vector<1x8x16xf32> -> vector<3x8x16xf32>
    %60 = vector.extract_strided_slice %52 {offsets = [0, 48], sizes = [8, 16], strides = [1, 1]} : vector<8x144xf32> to vector<8x16xf32>
    %61 = vector.shape_cast %60 : vector<8x16xf32> to vector<1x8x16xf32>
    %62 = vector.extract_strided_slice %52 {offsets = [0, 64], sizes = [8, 16], strides = [1, 1]} : vector<8x144xf32> to vector<8x16xf32>
    %63 = vector.shape_cast %62 : vector<8x16xf32> to vector<1x8x16xf32>
    %64 = vector.extract_strided_slice %52 {offsets = [0, 80], sizes = [8, 16], strides = [1, 1]} : vector<8x144xf32> to vector<8x16xf32>
    %65 = vector.shape_cast %64 : vector<8x16xf32> to vector<1x8x16xf32>
    %66 = tpu.concatenate %61, %63, %65 in 0 : vector<1x8x16xf32>, vector<1x8x16xf32>, vector<1x8x16xf32> -> vector<3x8x16xf32>
    %67 = vector.extract_strided_slice %52 {offsets = [0, 96], sizes = [8, 16], strides = [1, 1]} : vector<8x144xf32> to vector<8x16xf32>
    %68 = vector.shape_cast %67 : vector<8x16xf32> to vector<1x8x16xf32>
    %69 = vector.extract_strided_slice %52 {offsets = [0, 112], sizes = [8, 16], strides = [1, 1]} : vector<8x144xf32> to vector<8x16xf32>
    %70 = vector.shape_cast %69 : vector<8x16xf32> to vector<1x8x16xf32>
    %71 = vector.extract_strided_slice %52 {offsets = [0, 128], sizes = [8, 16], strides = [1, 1]} : vector<8x144xf32> to vector<8x16xf32>
    %72 = vector.shape_cast %71 : vector<8x16xf32> to vector<1x8x16xf32>
    %73 = tpu.concatenate %68, %70, %72 in 0 : vector<1x8x16xf32>, vector<1x8x16xf32>, vector<1x8x16xf32> -> vector<3x8x16xf32>
    %74 = arith.truncf %59 : vector<3x8x16xf32> to vector<3x8x16xbf16>
    %75 = arith.truncf %66 : vector<3x8x16xf32> to vector<3x8x16xbf16>
    "tpu.trace_start"() <{level = 10 : i32, message = "gtd,gsd->gts"}> : () -> ()
    %cst_22 = arith.constant dense<0.000000e+00> : vector<3x8x8xf32>
    %76 = tpu.matmul %74, %75, %cst_22 {dimension_numbers = #tpu.dot_dimension_numbers<[2], [2], [1], [1], [0, 0, 0, 1, 1, 1], [0], [0]>} : vector<3x8x16xbf16>, vector<3x8x16xbf16>, vector<3x8x8xf32> -> vector<3x8x8xf32>
    "tpu.trace_stop"() : () -> ()
    %77 = vector.shape_cast %18 : vector<8x8xf32> to vector<1x8x8xf32>
    %78 = vector.broadcast %77 : vector<1x8x8xf32> to vector<3x8x8xf32>
    %79 = arith.addf %76, %78 : vector<3x8x8xf32>
    %cst_23 = arith.constant dense<0xFF800000> : vector<3x8xf32>
    %80 = vector.multi_reduction <maximumf>, %79, %cst_23 [2] : vector<3x8x8xf32> to vector<3x8xf32>
    %81 = vector.shape_cast %80 : vector<3x8xf32> to vector<3x8x1xf32>
    %82 = vector.broadcast %81 : vector<3x8x1xf32> to vector<3x8x8xf32>
    %83 = arith.subf %79, %82 : vector<3x8x8xf32>
    %84 = math.exp %83 : vector<3x8x8xf32>
    %cst_24 = arith.constant dense<0.000000e+00> : vector<3x8xf32>
    %85 = vector.multi_reduction <add>, %84, %cst_24 [2] : vector<3x8x8xf32> to vector<3x8xf32>
    %86 = vector.shape_cast %85 : vector<3x8xf32> to vector<3x8x1xf32>
    %87 = tpu.reciprocal %86 {approx = true} : vector<3x8x1xf32> -> vector<3x8x1xf32>
    %88 = vector.broadcast %87 : vector<3x8x1xf32> to vector<3x8x8xf32>
    %89 = arith.mulf %84, %88 : vector<3x8x8xf32>
    %90 = arith.truncf %89 : vector<3x8x8xf32> to vector<3x8x8xbf16>
    %91 = arith.truncf %73 : vector<3x8x16xf32> to vector<3x8x16xbf16>
    "tpu.trace_start"() <{level = 10 : i32, message = "gts,gsd->gtd"}> : () -> ()
    %cst_25 = arith.constant dense<0.000000e+00> : vector<3x8x16xf32>
    %92 = tpu.matmul %90, %91, %cst_25 {dimension_numbers = #tpu.dot_dimension_numbers<[2], [1], [1], [2], [0, 0, 0, 1, 1, 2], [0], [0]>} : vector<3x8x8xbf16>, vector<3x8x16xbf16>, vector<3x8x16xf32> -> vector<3x8x16xf32>
    "tpu.trace_stop"() : () -> ()
    %93 = vector.extract_strided_slice %92 {offsets = [0, 0, 0], sizes = [1, 8, 16], strides = [1, 1, 1]} : vector<3x8x16xf32> to vector<1x8x16xf32>
    %94 = vector.shape_cast %93 : vector<1x8x16xf32> to vector<8x16xf32>
    %95 = vector.extract_strided_slice %92 {offsets = [1, 0, 0], sizes = [1, 8, 16], strides = [1, 1, 1]} : vector<3x8x16xf32> to vector<1x8x16xf32>
    %96 = vector.shape_cast %95 : vector<1x8x16xf32> to vector<8x16xf32>
    %97 = vector.extract_strided_slice %92 {offsets = [2, 0, 0], sizes = [1, 8, 16], strides = [1, 1, 1]} : vector<3x8x16xf32> to vector<1x8x16xf32>
    %98 = vector.shape_cast %97 : vector<1x8x16xf32> to vector<8x16xf32>
    %99 = tpu.concatenate %94, %96, %98 in 1 : vector<8x16xf32>, vector<8x16xf32>, vector<8x16xf32> -> vector<8x48xf32>
    %100 = arith.truncf %99 : vector<8x48xf32> to vector<8x48xbf16>
    %c0_26 = arith.constant 0 : index
    %c0_27 = arith.constant 0 : index
    %c0_28 = arith.constant 0 : index
    %101 = vector.load %arg6[%c0_26, %c0_27, %c0_28] : memref<3x48x48xbf16, #tpu.memory_space<vmem>>, vector<1x48x48xbf16>
    %102 = vector.shape_cast %101 : vector<1x48x48xbf16> to vector<48x48xbf16>
    %cst_29 = arith.constant dense<0.000000e+00> : vector<8x48xf32>
    %103 = tpu.matmul %100, %102, %cst_29 {dimension_numbers = #tpu.dot_dimension_numbers<[1], [0], [0], [1], [0, 0, 1, 1], [], []>} : vector<8x48xbf16>, vector<48x48xbf16>, vector<8x48xf32> -> vector<8x48xf32>
    %104 = vector.extract_strided_slice %20 {offsets = [4, 0], sizes = [1, 48], strides = [1, 1]} : vector<6x48xf32> to vector<1x48xf32>
    %105 = vector.broadcast %104 : vector<1x48xf32> to vector<8x48xf32>
    %106 = arith.addf %103, %105 : vector<8x48xf32>
    %107 = arith.addf %12, %106 : vector<8x48xf32>
    %108 = vector.extract_strided_slice %20 {offsets = [2, 0], sizes = [1, 48], strides = [1, 1]} : vector<6x48xf32> to vector<1x48xf32>
    %109 = vector.extract_strided_slice %20 {offsets = [3, 0], sizes = [1, 48], strides = [1, 1]} : vector<6x48xf32> to vector<1x48xf32>
    %cst_30 = arith.constant dense<0.000000e+00> : vector<8xf32>
    %110 = vector.multi_reduction <add>, %107, %cst_30 [1] : vector<8x48xf32> to vector<8xf32>
    %111 = vector.shape_cast %110 : vector<8xf32> to vector<8x1xf32>
    %cst_31 = arith.constant 4.800000e+01 : f32
    %112 = vector.broadcast %cst_31 : f32 to vector<8x1xf32>
    %113 = arith.divf %111, %112 : vector<8x1xf32>
    %114 = vector.broadcast %113 : vector<8x1xf32> to vector<8x48xf32>
    %115 = arith.subf %107, %114 : vector<8x48xf32>
    %116 = arith.mulf %115, %115 : vector<8x48xf32>
    %cst_32 = arith.constant dense<0.000000e+00> : vector<8xf32>
    %117 = vector.multi_reduction <add>, %116, %cst_32 [1] : vector<8x48xf32> to vector<8xf32>
    %118 = vector.shape_cast %117 : vector<8xf32> to vector<8x1xf32>
    %cst_33 = arith.constant 4.800000e+01 : f32
    %119 = vector.broadcast %cst_33 : f32 to vector<8x1xf32>
    %120 = arith.divf %118, %119 : vector<8x1xf32>
    %121 = vector.broadcast %113 : vector<8x1xf32> to vector<8x48xf32>
    %122 = arith.subf %107, %121 : vector<8x48xf32>
    %cst_34 = arith.constant 9.99999974E-6 : f32
    %123 = vector.broadcast %cst_34 : f32 to vector<8x1xf32>
    %124 = arith.addf %120, %123 : vector<8x1xf32>
    %125 = math.rsqrt %124 : vector<8x1xf32>
    %126 = vector.broadcast %125 : vector<8x1xf32> to vector<8x48xf32>
    %127 = arith.mulf %122, %126 : vector<8x48xf32>
    %128 = vector.broadcast %108 : vector<1x48xf32> to vector<8x48xf32>
    %129 = arith.mulf %127, %128 : vector<8x48xf32>
    %130 = vector.broadcast %109 : vector<1x48xf32> to vector<8x48xf32>
    %131 = arith.addf %129, %130 : vector<8x48xf32>
    %132 = arith.truncf %131 : vector<8x48xf32> to vector<8x48xbf16>
    %c0_35 = arith.constant 0 : index
    %c0_36 = arith.constant 0 : index
    %c0_37 = arith.constant 0 : index
    %133 = vector.load %arg8[%c0_35, %c0_36, %c0_37] : memref<3x48x192xbf16, #tpu.memory_space<vmem>>, vector<1x48x192xbf16>
    %134 = vector.shape_cast %133 : vector<1x48x192xbf16> to vector<48x192xbf16>
    %cst_38 = arith.constant dense<0.000000e+00> : vector<8x192xf32>
    %135 = tpu.matmul %132, %134, %cst_38 {dimension_numbers = #tpu.dot_dimension_numbers<[1], [0], [0], [1], [0, 0, 1, 1], [], []>} : vector<8x48xbf16>, vector<48x192xbf16>, vector<8x192xf32> -> vector<8x192xf32>
    %c0_39 = arith.constant 0 : index
    %c0_40 = arith.constant 0 : index
    %c0_41 = arith.constant 0 : index
    %136 = vector.load %arg9[%c0_39, %c0_40, %c0_41] : memref<3x1x192xf32, #tpu.memory_space<vmem>>, vector<1x1x192xf32>
    %137 = vector.shape_cast %136 : vector<1x1x192xf32> to vector<1x192xf32>
    %138 = vector.broadcast %137 : vector<1x192xf32> to vector<8x192xf32>
    %139 = arith.addf %135, %138 : vector<8x192xf32>
    %cst_42 = arith.constant 5.000000e-01 : f32
    %140 = vector.broadcast %cst_42 : f32 to vector<8x192xf32>
    %141 = arith.mulf %140, %139 : vector<8x192xf32>
    %cst_43 = arith.constant 4.471500e-02 : f32
    %142 = vector.broadcast %cst_43 : f32 to vector<8x192xf32>
    %143 = arith.mulf %142, %139 : vector<8x192xf32>
    %144 = arith.mulf %143, %139 : vector<8x192xf32>
    %145 = arith.mulf %144, %139 : vector<8x192xf32>
    %146 = arith.addf %139, %145 : vector<8x192xf32>
    %cst_44 = arith.constant 0.797884583 : f32
    %147 = vector.broadcast %cst_44 : f32 to vector<8x192xf32>
    %148 = arith.mulf %147, %146 : vector<8x192xf32>
    %149 = math.tanh %148 : vector<8x192xf32>
    %cst_45 = arith.constant 1.000000e+00 : f32
    %150 = vector.broadcast %cst_45 : f32 to vector<8x192xf32>
    %151 = arith.addf %150, %149 : vector<8x192xf32>
    %152 = arith.mulf %141, %151 : vector<8x192xf32>
    %153 = arith.truncf %152 : vector<8x192xf32> to vector<8x192xbf16>
    %c0_46 = arith.constant 0 : index
    %c0_47 = arith.constant 0 : index
    %c0_48 = arith.constant 0 : index
    %154 = vector.load %arg10[%c0_46, %c0_47, %c0_48] : memref<3x192x48xbf16, #tpu.memory_space<vmem>>, vector<1x192x48xbf16>
    %155 = vector.shape_cast %154 : vector<1x192x48xbf16> to vector<192x48xbf16>
    %cst_49 = arith.constant dense<0.000000e+00> : vector<8x48xf32>
    %156 = tpu.matmul %153, %155, %cst_49 {dimension_numbers = #tpu.dot_dimension_numbers<[1], [0], [0], [1], [0, 0, 1, 1], [], []>} : vector<8x192xbf16>, vector<192x48xbf16>, vector<8x48xf32> -> vector<8x48xf32>
    %157 = arith.addf %107, %156 : vector<8x48xf32>
    %158 = vector.extract_strided_slice %20 {offsets = [5, 0], sizes = [1, 48], strides = [1, 1]} : vector<6x48xf32> to vector<1x48xf32>
    %159 = vector.broadcast %158 : vector<1x48xf32> to vector<8x48xf32>
    %160 = arith.addf %157, %159 : vector<8x48xf32>
    %c1 = arith.constant 1 : index
    %c0_50 = arith.constant 0 : index
    %c0_51 = arith.constant 0 : index
    %161 = vector.load %arg7[%c1, %c0_50, %c0_51] : memref<3x6x48xf32, #tpu.memory_space<vmem>>, vector<1x6x48xf32>
    %162 = vector.shape_cast %161 : vector<1x6x48xf32> to vector<6x48xf32>
    %163 = vector.extract_strided_slice %162 {offsets = [0, 0], sizes = [1, 48], strides = [1, 1]} : vector<6x48xf32> to vector<1x48xf32>
    %164 = vector.extract_strided_slice %162 {offsets = [1, 0], sizes = [1, 48], strides = [1, 1]} : vector<6x48xf32> to vector<1x48xf32>
    %cst_52 = arith.constant dense<0.000000e+00> : vector<8xf32>
    %165 = vector.multi_reduction <add>, %160, %cst_52 [1] : vector<8x48xf32> to vector<8xf32>
    %166 = vector.shape_cast %165 : vector<8xf32> to vector<8x1xf32>
    %cst_53 = arith.constant 4.800000e+01 : f32
    %167 = vector.broadcast %cst_53 : f32 to vector<8x1xf32>
    %168 = arith.divf %166, %167 : vector<8x1xf32>
    %169 = vector.broadcast %168 : vector<8x1xf32> to vector<8x48xf32>
    %170 = arith.subf %160, %169 : vector<8x48xf32>
    %171 = arith.mulf %170, %170 : vector<8x48xf32>
    %cst_54 = arith.constant dense<0.000000e+00> : vector<8xf32>
    %172 = vector.multi_reduction <add>, %171, %cst_54 [1] : vector<8x48xf32> to vector<8xf32>
    %173 = vector.shape_cast %172 : vector<8xf32> to vector<8x1xf32>
    %cst_55 = arith.constant 4.800000e+01 : f32
    %174 = vector.broadcast %cst_55 : f32 to vector<8x1xf32>
    %175 = arith.divf %173, %174 : vector<8x1xf32>
    %176 = vector.broadcast %168 : vector<8x1xf32> to vector<8x48xf32>
    %177 = arith.subf %160, %176 : vector<8x48xf32>
    %cst_56 = arith.constant 9.99999974E-6 : f32
    %178 = vector.broadcast %cst_56 : f32 to vector<8x1xf32>
    %179 = arith.addf %175, %178 : vector<8x1xf32>
    %180 = math.rsqrt %179 : vector<8x1xf32>
    %181 = vector.broadcast %180 : vector<8x1xf32> to vector<8x48xf32>
    %182 = arith.mulf %177, %181 : vector<8x48xf32>
    %183 = vector.broadcast %163 : vector<1x48xf32> to vector<8x48xf32>
    %184 = arith.mulf %182, %183 : vector<8x48xf32>
    %185 = vector.broadcast %164 : vector<1x48xf32> to vector<8x48xf32>
    %186 = arith.addf %184, %185 : vector<8x48xf32>
    %187 = arith.truncf %186 : vector<8x48xf32> to vector<8x48xbf16>
    %c1_57 = arith.constant 1 : index
    %c0_58 = arith.constant 0 : index
    %c0_59 = arith.constant 0 : index
    %188 = vector.load %arg4[%c1_57, %c0_58, %c0_59] : memref<3x48x144xbf16, #tpu.memory_space<vmem>>, vector<1x48x144xbf16>
    %189 = vector.shape_cast %188 : vector<1x48x144xbf16> to vector<48x144xbf16>
    %cst_60 = arith.constant dense<0.000000e+00> : vector<8x144xf32>
    %190 = tpu.matmul %187, %189, %cst_60 {dimension_numbers = #tpu.dot_dimension_numbers<[1], [0], [0], [1], [0, 0, 1, 1], [], []>} : vector<8x48xbf16>, vector<48x144xbf16>, vector<8x144xf32> -> vector<8x144xf32>
    %c1_61 = arith.constant 1 : index
    %c0_62 = arith.constant 0 : index
    %c0_63 = arith.constant 0 : index
    %191 = vector.load %arg5[%c1_61, %c0_62, %c0_63] : memref<3x1x144xf32, #tpu.memory_space<vmem>>, vector<1x1x144xf32>
    %192 = vector.shape_cast %191 : vector<1x1x144xf32> to vector<1x144xf32>
    %193 = vector.broadcast %192 : vector<1x144xf32> to vector<8x144xf32>
    %194 = arith.addf %190, %193 : vector<8x144xf32>
    %195 = vector.extract_strided_slice %194 {offsets = [0, 0], sizes = [8, 16], strides = [1, 1]} : vector<8x144xf32> to vector<8x16xf32>
    %196 = vector.shape_cast %195 : vector<8x16xf32> to vector<1x8x16xf32>
    %197 = vector.extract_strided_slice %194 {offsets = [0, 16], sizes = [8, 16], strides = [1, 1]} : vector<8x144xf32> to vector<8x16xf32>
    %198 = vector.shape_cast %197 : vector<8x16xf32> to vector<1x8x16xf32>
    %199 = vector.extract_strided_slice %194 {offsets = [0, 32], sizes = [8, 16], strides = [1, 1]} : vector<8x144xf32> to vector<8x16xf32>
    %200 = vector.shape_cast %199 : vector<8x16xf32> to vector<1x8x16xf32>
    %201 = tpu.concatenate %196, %198, %200 in 0 : vector<1x8x16xf32>, vector<1x8x16xf32>, vector<1x8x16xf32> -> vector<3x8x16xf32>
    %202 = vector.extract_strided_slice %194 {offsets = [0, 48], sizes = [8, 16], strides = [1, 1]} : vector<8x144xf32> to vector<8x16xf32>
    %203 = vector.shape_cast %202 : vector<8x16xf32> to vector<1x8x16xf32>
    %204 = vector.extract_strided_slice %194 {offsets = [0, 64], sizes = [8, 16], strides = [1, 1]} : vector<8x144xf32> to vector<8x16xf32>
    %205 = vector.shape_cast %204 : vector<8x16xf32> to vector<1x8x16xf32>
    %206 = vector.extract_strided_slice %194 {offsets = [0, 80], sizes = [8, 16], strides = [1, 1]} : vector<8x144xf32> to vector<8x16xf32>
    %207 = vector.shape_cast %206 : vector<8x16xf32> to vector<1x8x16xf32>
    %208 = tpu.concatenate %203, %205, %207 in 0 : vector<1x8x16xf32>, vector<1x8x16xf32>, vector<1x8x16xf32> -> vector<3x8x16xf32>
    %209 = vector.extract_strided_slice %194 {offsets = [0, 96], sizes = [8, 16], strides = [1, 1]} : vector<8x144xf32> to vector<8x16xf32>
    %210 = vector.shape_cast %209 : vector<8x16xf32> to vector<1x8x16xf32>
    %211 = vector.extract_strided_slice %194 {offsets = [0, 112], sizes = [8, 16], strides = [1, 1]} : vector<8x144xf32> to vector<8x16xf32>
    %212 = vector.shape_cast %211 : vector<8x16xf32> to vector<1x8x16xf32>
    %213 = vector.extract_strided_slice %194 {offsets = [0, 128], sizes = [8, 16], strides = [1, 1]} : vector<8x144xf32> to vector<8x16xf32>
    %214 = vector.shape_cast %213 : vector<8x16xf32> to vector<1x8x16xf32>
    %215 = tpu.concatenate %210, %212, %214 in 0 : vector<1x8x16xf32>, vector<1x8x16xf32>, vector<1x8x16xf32> -> vector<3x8x16xf32>
    %216 = arith.truncf %201 : vector<3x8x16xf32> to vector<3x8x16xbf16>
    %217 = arith.truncf %208 : vector<3x8x16xf32> to vector<3x8x16xbf16>
    "tpu.trace_start"() <{level = 10 : i32, message = "gtd,gsd->gts"}> : () -> ()
    %cst_64 = arith.constant dense<0.000000e+00> : vector<3x8x8xf32>
    %218 = tpu.matmul %216, %217, %cst_64 {dimension_numbers = #tpu.dot_dimension_numbers<[2], [2], [1], [1], [0, 0, 0, 1, 1, 1], [0], [0]>} : vector<3x8x16xbf16>, vector<3x8x16xbf16>, vector<3x8x8xf32> -> vector<3x8x8xf32>
    "tpu.trace_stop"() : () -> ()
    %219 = vector.shape_cast %18 : vector<8x8xf32> to vector<1x8x8xf32>
    %220 = vector.broadcast %219 : vector<1x8x8xf32> to vector<3x8x8xf32>
    %221 = arith.addf %218, %220 : vector<3x8x8xf32>
    %cst_65 = arith.constant dense<0xFF800000> : vector<3x8xf32>
    %222 = vector.multi_reduction <maximumf>, %221, %cst_65 [2] : vector<3x8x8xf32> to vector<3x8xf32>
    %223 = vector.shape_cast %222 : vector<3x8xf32> to vector<3x8x1xf32>
    %224 = vector.broadcast %223 : vector<3x8x1xf32> to vector<3x8x8xf32>
    %225 = arith.subf %221, %224 : vector<3x8x8xf32>
    %226 = math.exp %225 : vector<3x8x8xf32>
    %cst_66 = arith.constant dense<0.000000e+00> : vector<3x8xf32>
    %227 = vector.multi_reduction <add>, %226, %cst_66 [2] : vector<3x8x8xf32> to vector<3x8xf32>
    %228 = vector.shape_cast %227 : vector<3x8xf32> to vector<3x8x1xf32>
    %229 = tpu.reciprocal %228 {approx = true} : vector<3x8x1xf32> -> vector<3x8x1xf32>
    %230 = vector.broadcast %229 : vector<3x8x1xf32> to vector<3x8x8xf32>
    %231 = arith.mulf %226, %230 : vector<3x8x8xf32>
    %232 = arith.truncf %231 : vector<3x8x8xf32> to vector<3x8x8xbf16>
    %233 = arith.truncf %215 : vector<3x8x16xf32> to vector<3x8x16xbf16>
    "tpu.trace_start"() <{level = 10 : i32, message = "gts,gsd->gtd"}> : () -> ()
    %cst_67 = arith.constant dense<0.000000e+00> : vector<3x8x16xf32>
    %234 = tpu.matmul %232, %233, %cst_67 {dimension_numbers = #tpu.dot_dimension_numbers<[2], [1], [1], [2], [0, 0, 0, 1, 1, 2], [0], [0]>} : vector<3x8x8xbf16>, vector<3x8x16xbf16>, vector<3x8x16xf32> -> vector<3x8x16xf32>
    "tpu.trace_stop"() : () -> ()
    %235 = vector.extract_strided_slice %234 {offsets = [0, 0, 0], sizes = [1, 8, 16], strides = [1, 1, 1]} : vector<3x8x16xf32> to vector<1x8x16xf32>
    %236 = vector.shape_cast %235 : vector<1x8x16xf32> to vector<8x16xf32>
    %237 = vector.extract_strided_slice %234 {offsets = [1, 0, 0], sizes = [1, 8, 16], strides = [1, 1, 1]} : vector<3x8x16xf32> to vector<1x8x16xf32>
    %238 = vector.shape_cast %237 : vector<1x8x16xf32> to vector<8x16xf32>
    %239 = vector.extract_strided_slice %234 {offsets = [2, 0, 0], sizes = [1, 8, 16], strides = [1, 1, 1]} : vector<3x8x16xf32> to vector<1x8x16xf32>
    %240 = vector.shape_cast %239 : vector<1x8x16xf32> to vector<8x16xf32>
    %241 = tpu.concatenate %236, %238, %240 in 1 : vector<8x16xf32>, vector<8x16xf32>, vector<8x16xf32> -> vector<8x48xf32>
    %242 = arith.truncf %241 : vector<8x48xf32> to vector<8x48xbf16>
    %c1_68 = arith.constant 1 : index
    %c0_69 = arith.constant 0 : index
    %c0_70 = arith.constant 0 : index
    %243 = vector.load %arg6[%c1_68, %c0_69, %c0_70] : memref<3x48x48xbf16, #tpu.memory_space<vmem>>, vector<1x48x48xbf16>
    %244 = vector.shape_cast %243 : vector<1x48x48xbf16> to vector<48x48xbf16>
    %cst_71 = arith.constant dense<0.000000e+00> : vector<8x48xf32>
    %245 = tpu.matmul %242, %244, %cst_71 {dimension_numbers = #tpu.dot_dimension_numbers<[1], [0], [0], [1], [0, 0, 1, 1], [], []>} : vector<8x48xbf16>, vector<48x48xbf16>, vector<8x48xf32> -> vector<8x48xf32>
    %246 = vector.extract_strided_slice %162 {offsets = [4, 0], sizes = [1, 48], strides = [1, 1]} : vector<6x48xf32> to vector<1x48xf32>
    %247 = vector.broadcast %246 : vector<1x48xf32> to vector<8x48xf32>
    %248 = arith.addf %245, %247 : vector<8x48xf32>
    %249 = arith.addf %160, %248 : vector<8x48xf32>
    %250 = vector.extract_strided_slice %162 {offsets = [2, 0], sizes = [1, 48], strides = [1, 1]} : vector<6x48xf32> to vector<1x48xf32>
    %251 = vector.extract_strided_slice %162 {offsets = [3, 0], sizes = [1, 48], strides = [1, 1]} : vector<6x48xf32> to vector<1x48xf32>
    %cst_72 = arith.constant dense<0.000000e+00> : vector<8xf32>
    %252 = vector.multi_reduction <add>, %249, %cst_72 [1] : vector<8x48xf32> to vector<8xf32>
    %253 = vector.shape_cast %252 : vector<8xf32> to vector<8x1xf32>
    %cst_73 = arith.constant 4.800000e+01 : f32
    %254 = vector.broadcast %cst_73 : f32 to vector<8x1xf32>
    %255 = arith.divf %253, %254 : vector<8x1xf32>
    %256 = vector.broadcast %255 : vector<8x1xf32> to vector<8x48xf32>
    %257 = arith.subf %249, %256 : vector<8x48xf32>
    %258 = arith.mulf %257, %257 : vector<8x48xf32>
    %cst_74 = arith.constant dense<0.000000e+00> : vector<8xf32>
    %259 = vector.multi_reduction <add>, %258, %cst_74 [1] : vector<8x48xf32> to vector<8xf32>
    %260 = vector.shape_cast %259 : vector<8xf32> to vector<8x1xf32>
    %cst_75 = arith.constant 4.800000e+01 : f32
    %261 = vector.broadcast %cst_75 : f32 to vector<8x1xf32>
    %262 = arith.divf %260, %261 : vector<8x1xf32>
    %263 = vector.broadcast %255 : vector<8x1xf32> to vector<8x48xf32>
    %264 = arith.subf %249, %263 : vector<8x48xf32>
    %cst_76 = arith.constant 9.99999974E-6 : f32
    %265 = vector.broadcast %cst_76 : f32 to vector<8x1xf32>
    %266 = arith.addf %262, %265 : vector<8x1xf32>
    %267 = math.rsqrt %266 : vector<8x1xf32>
    %268 = vector.broadcast %267 : vector<8x1xf32> to vector<8x48xf32>
    %269 = arith.mulf %264, %268 : vector<8x48xf32>
    %270 = vector.broadcast %250 : vector<1x48xf32> to vector<8x48xf32>
    %271 = arith.mulf %269, %270 : vector<8x48xf32>
    %272 = vector.broadcast %251 : vector<1x48xf32> to vector<8x48xf32>
    %273 = arith.addf %271, %272 : vector<8x48xf32>
    %274 = arith.truncf %273 : vector<8x48xf32> to vector<8x48xbf16>
    %c1_77 = arith.constant 1 : index
    %c0_78 = arith.constant 0 : index
    %c0_79 = arith.constant 0 : index
    %275 = vector.load %arg8[%c1_77, %c0_78, %c0_79] : memref<3x48x192xbf16, #tpu.memory_space<vmem>>, vector<1x48x192xbf16>
    %276 = vector.shape_cast %275 : vector<1x48x192xbf16> to vector<48x192xbf16>
    %cst_80 = arith.constant dense<0.000000e+00> : vector<8x192xf32>
    %277 = tpu.matmul %274, %276, %cst_80 {dimension_numbers = #tpu.dot_dimension_numbers<[1], [0], [0], [1], [0, 0, 1, 1], [], []>} : vector<8x48xbf16>, vector<48x192xbf16>, vector<8x192xf32> -> vector<8x192xf32>
    %c1_81 = arith.constant 1 : index
    %c0_82 = arith.constant 0 : index
    %c0_83 = arith.constant 0 : index
    %278 = vector.load %arg9[%c1_81, %c0_82, %c0_83] : memref<3x1x192xf32, #tpu.memory_space<vmem>>, vector<1x1x192xf32>
    %279 = vector.shape_cast %278 : vector<1x1x192xf32> to vector<1x192xf32>
    %280 = vector.broadcast %279 : vector<1x192xf32> to vector<8x192xf32>
    %281 = arith.addf %277, %280 : vector<8x192xf32>
    %cst_84 = arith.constant 5.000000e-01 : f32
    %282 = vector.broadcast %cst_84 : f32 to vector<8x192xf32>
    %283 = arith.mulf %282, %281 : vector<8x192xf32>
    %cst_85 = arith.constant 4.471500e-02 : f32
    %284 = vector.broadcast %cst_85 : f32 to vector<8x192xf32>
    %285 = arith.mulf %284, %281 : vector<8x192xf32>
    %286 = arith.mulf %285, %281 : vector<8x192xf32>
    %287 = arith.mulf %286, %281 : vector<8x192xf32>
    %288 = arith.addf %281, %287 : vector<8x192xf32>
    %cst_86 = arith.constant 0.797884583 : f32
    %289 = vector.broadcast %cst_86 : f32 to vector<8x192xf32>
    %290 = arith.mulf %289, %288 : vector<8x192xf32>
    %291 = math.tanh %290 : vector<8x192xf32>
    %cst_87 = arith.constant 1.000000e+00 : f32
    %292 = vector.broadcast %cst_87 : f32 to vector<8x192xf32>
    %293 = arith.addf %292, %291 : vector<8x192xf32>
    %294 = arith.mulf %283, %293 : vector<8x192xf32>
    %295 = arith.truncf %294 : vector<8x192xf32> to vector<8x192xbf16>
    %c1_88 = arith.constant 1 : index
    %c0_89 = arith.constant 0 : index
    %c0_90 = arith.constant 0 : index
    %296 = vector.load %arg10[%c1_88, %c0_89, %c0_90] : memref<3x192x48xbf16, #tpu.memory_space<vmem>>, vector<1x192x48xbf16>
    %297 = vector.shape_cast %296 : vector<1x192x48xbf16> to vector<192x48xbf16>
    %cst_91 = arith.constant dense<0.000000e+00> : vector<8x48xf32>
    %298 = tpu.matmul %295, %297, %cst_91 {dimension_numbers = #tpu.dot_dimension_numbers<[1], [0], [0], [1], [0, 0, 1, 1], [], []>} : vector<8x192xbf16>, vector<192x48xbf16>, vector<8x48xf32> -> vector<8x48xf32>
    %299 = arith.addf %249, %298 : vector<8x48xf32>
    %300 = vector.extract_strided_slice %162 {offsets = [5, 0], sizes = [1, 48], strides = [1, 1]} : vector<6x48xf32> to vector<1x48xf32>
    %301 = vector.broadcast %300 : vector<1x48xf32> to vector<8x48xf32>
    %302 = arith.addf %299, %301 : vector<8x48xf32>
    %c2 = arith.constant 2 : index
    %c0_92 = arith.constant 0 : index
    %c0_93 = arith.constant 0 : index
    %303 = vector.load %arg7[%c2, %c0_92, %c0_93] : memref<3x6x48xf32, #tpu.memory_space<vmem>>, vector<1x6x48xf32>
    %304 = vector.shape_cast %303 : vector<1x6x48xf32> to vector<6x48xf32>
    %305 = vector.extract_strided_slice %304 {offsets = [0, 0], sizes = [1, 48], strides = [1, 1]} : vector<6x48xf32> to vector<1x48xf32>
    %306 = vector.extract_strided_slice %304 {offsets = [1, 0], sizes = [1, 48], strides = [1, 1]} : vector<6x48xf32> to vector<1x48xf32>
    %cst_94 = arith.constant dense<0.000000e+00> : vector<8xf32>
    %307 = vector.multi_reduction <add>, %302, %cst_94 [1] : vector<8x48xf32> to vector<8xf32>
    %308 = vector.shape_cast %307 : vector<8xf32> to vector<8x1xf32>
    %cst_95 = arith.constant 4.800000e+01 : f32
    %309 = vector.broadcast %cst_95 : f32 to vector<8x1xf32>
    %310 = arith.divf %308, %309 : vector<8x1xf32>
    %311 = vector.broadcast %310 : vector<8x1xf32> to vector<8x48xf32>
    %312 = arith.subf %302, %311 : vector<8x48xf32>
    %313 = arith.mulf %312, %312 : vector<8x48xf32>
    %cst_96 = arith.constant dense<0.000000e+00> : vector<8xf32>
    %314 = vector.multi_reduction <add>, %313, %cst_96 [1] : vector<8x48xf32> to vector<8xf32>
    %315 = vector.shape_cast %314 : vector<8xf32> to vector<8x1xf32>
    %cst_97 = arith.constant 4.800000e+01 : f32
    %316 = vector.broadcast %cst_97 : f32 to vector<8x1xf32>
    %317 = arith.divf %315, %316 : vector<8x1xf32>
    %318 = vector.broadcast %310 : vector<8x1xf32> to vector<8x48xf32>
    %319 = arith.subf %302, %318 : vector<8x48xf32>
    %cst_98 = arith.constant 9.99999974E-6 : f32
    %320 = vector.broadcast %cst_98 : f32 to vector<8x1xf32>
    %321 = arith.addf %317, %320 : vector<8x1xf32>
    %322 = math.rsqrt %321 : vector<8x1xf32>
    %323 = vector.broadcast %322 : vector<8x1xf32> to vector<8x48xf32>
    %324 = arith.mulf %319, %323 : vector<8x48xf32>
    %325 = vector.broadcast %305 : vector<1x48xf32> to vector<8x48xf32>
    %326 = arith.mulf %324, %325 : vector<8x48xf32>
    %327 = vector.broadcast %306 : vector<1x48xf32> to vector<8x48xf32>
    %328 = arith.addf %326, %327 : vector<8x48xf32>
    %329 = arith.truncf %328 : vector<8x48xf32> to vector<8x48xbf16>
    %c2_99 = arith.constant 2 : index
    %c0_100 = arith.constant 0 : index
    %c0_101 = arith.constant 0 : index
    %330 = vector.load %arg4[%c2_99, %c0_100, %c0_101] : memref<3x48x144xbf16, #tpu.memory_space<vmem>>, vector<1x48x144xbf16>
    %331 = vector.shape_cast %330 : vector<1x48x144xbf16> to vector<48x144xbf16>
    %cst_102 = arith.constant dense<0.000000e+00> : vector<8x144xf32>
    %332 = tpu.matmul %329, %331, %cst_102 {dimension_numbers = #tpu.dot_dimension_numbers<[1], [0], [0], [1], [0, 0, 1, 1], [], []>} : vector<8x48xbf16>, vector<48x144xbf16>, vector<8x144xf32> -> vector<8x144xf32>
    %c2_103 = arith.constant 2 : index
    %c0_104 = arith.constant 0 : index
    %c0_105 = arith.constant 0 : index
    %333 = vector.load %arg5[%c2_103, %c0_104, %c0_105] : memref<3x1x144xf32, #tpu.memory_space<vmem>>, vector<1x1x144xf32>
    %334 = vector.shape_cast %333 : vector<1x1x144xf32> to vector<1x144xf32>
    %335 = vector.broadcast %334 : vector<1x144xf32> to vector<8x144xf32>
    %336 = arith.addf %332, %335 : vector<8x144xf32>
    %337 = vector.extract_strided_slice %336 {offsets = [0, 0], sizes = [8, 16], strides = [1, 1]} : vector<8x144xf32> to vector<8x16xf32>
    %338 = vector.shape_cast %337 : vector<8x16xf32> to vector<1x8x16xf32>
    %339 = vector.extract_strided_slice %336 {offsets = [0, 16], sizes = [8, 16], strides = [1, 1]} : vector<8x144xf32> to vector<8x16xf32>
    %340 = vector.shape_cast %339 : vector<8x16xf32> to vector<1x8x16xf32>
    %341 = vector.extract_strided_slice %336 {offsets = [0, 32], sizes = [8, 16], strides = [1, 1]} : vector<8x144xf32> to vector<8x16xf32>
    %342 = vector.shape_cast %341 : vector<8x16xf32> to vector<1x8x16xf32>
    %343 = tpu.concatenate %338, %340, %342 in 0 : vector<1x8x16xf32>, vector<1x8x16xf32>, vector<1x8x16xf32> -> vector<3x8x16xf32>
    %344 = vector.extract_strided_slice %336 {offsets = [0, 48], sizes = [8, 16], strides = [1, 1]} : vector<8x144xf32> to vector<8x16xf32>
    %345 = vector.shape_cast %344 : vector<8x16xf32> to vector<1x8x16xf32>
    %346 = vector.extract_strided_slice %336 {offsets = [0, 64], sizes = [8, 16], strides = [1, 1]} : vector<8x144xf32> to vector<8x16xf32>
    %347 = vector.shape_cast %346 : vector<8x16xf32> to vector<1x8x16xf32>
    %348 = vector.extract_strided_slice %336 {offsets = [0, 80], sizes = [8, 16], strides = [1, 1]} : vector<8x144xf32> to vector<8x16xf32>
    %349 = vector.shape_cast %348 : vector<8x16xf32> to vector<1x8x16xf32>
    %350 = tpu.concatenate %345, %347, %349 in 0 : vector<1x8x16xf32>, vector<1x8x16xf32>, vector<1x8x16xf32> -> vector<3x8x16xf32>
    %351 = vector.extract_strided_slice %336 {offsets = [0, 96], sizes = [8, 16], strides = [1, 1]} : vector<8x144xf32> to vector<8x16xf32>
    %352 = vector.shape_cast %351 : vector<8x16xf32> to vector<1x8x16xf32>
    %353 = vector.extract_strided_slice %336 {offsets = [0, 112], sizes = [8, 16], strides = [1, 1]} : vector<8x144xf32> to vector<8x16xf32>
    %354 = vector.shape_cast %353 : vector<8x16xf32> to vector<1x8x16xf32>
    %355 = vector.extract_strided_slice %336 {offsets = [0, 128], sizes = [8, 16], strides = [1, 1]} : vector<8x144xf32> to vector<8x16xf32>
    %356 = vector.shape_cast %355 : vector<8x16xf32> to vector<1x8x16xf32>
    %357 = tpu.concatenate %352, %354, %356 in 0 : vector<1x8x16xf32>, vector<1x8x16xf32>, vector<1x8x16xf32> -> vector<3x8x16xf32>
    %358 = arith.truncf %343 : vector<3x8x16xf32> to vector<3x8x16xbf16>
    %359 = arith.truncf %350 : vector<3x8x16xf32> to vector<3x8x16xbf16>
    "tpu.trace_start"() <{level = 10 : i32, message = "gtd,gsd->gts"}> : () -> ()
    %cst_106 = arith.constant dense<0.000000e+00> : vector<3x8x8xf32>
    %360 = tpu.matmul %358, %359, %cst_106 {dimension_numbers = #tpu.dot_dimension_numbers<[2], [2], [1], [1], [0, 0, 0, 1, 1, 1], [0], [0]>} : vector<3x8x16xbf16>, vector<3x8x16xbf16>, vector<3x8x8xf32> -> vector<3x8x8xf32>
    "tpu.trace_stop"() : () -> ()
    %361 = vector.shape_cast %18 : vector<8x8xf32> to vector<1x8x8xf32>
    %362 = vector.broadcast %361 : vector<1x8x8xf32> to vector<3x8x8xf32>
    %363 = arith.addf %360, %362 : vector<3x8x8xf32>
    %cst_107 = arith.constant dense<0xFF800000> : vector<3x8xf32>
    %364 = vector.multi_reduction <maximumf>, %363, %cst_107 [2] : vector<3x8x8xf32> to vector<3x8xf32>
    %365 = vector.shape_cast %364 : vector<3x8xf32> to vector<3x8x1xf32>
    %366 = vector.broadcast %365 : vector<3x8x1xf32> to vector<3x8x8xf32>
    %367 = arith.subf %363, %366 : vector<3x8x8xf32>
    %368 = math.exp %367 : vector<3x8x8xf32>
    %cst_108 = arith.constant dense<0.000000e+00> : vector<3x8xf32>
    %369 = vector.multi_reduction <add>, %368, %cst_108 [2] : vector<3x8x8xf32> to vector<3x8xf32>
    %370 = vector.shape_cast %369 : vector<3x8xf32> to vector<3x8x1xf32>
    %371 = tpu.reciprocal %370 {approx = true} : vector<3x8x1xf32> -> vector<3x8x1xf32>
    %372 = vector.broadcast %371 : vector<3x8x1xf32> to vector<3x8x8xf32>
    %373 = arith.mulf %368, %372 : vector<3x8x8xf32>
    %374 = arith.truncf %373 : vector<3x8x8xf32> to vector<3x8x8xbf16>
    %375 = arith.truncf %357 : vector<3x8x16xf32> to vector<3x8x16xbf16>
    "tpu.trace_start"() <{level = 10 : i32, message = "gts,gsd->gtd"}> : () -> ()
    %cst_109 = arith.constant dense<0.000000e+00> : vector<3x8x16xf32>
    %376 = tpu.matmul %374, %375, %cst_109 {dimension_numbers = #tpu.dot_dimension_numbers<[2], [1], [1], [2], [0, 0, 0, 1, 1, 2], [0], [0]>} : vector<3x8x8xbf16>, vector<3x8x16xbf16>, vector<3x8x16xf32> -> vector<3x8x16xf32>
    "tpu.trace_stop"() : () -> ()
    %377 = vector.extract_strided_slice %376 {offsets = [0, 0, 0], sizes = [1, 8, 16], strides = [1, 1, 1]} : vector<3x8x16xf32> to vector<1x8x16xf32>
    %378 = vector.shape_cast %377 : vector<1x8x16xf32> to vector<8x16xf32>
    %379 = vector.extract_strided_slice %376 {offsets = [1, 0, 0], sizes = [1, 8, 16], strides = [1, 1, 1]} : vector<3x8x16xf32> to vector<1x8x16xf32>
    %380 = vector.shape_cast %379 : vector<1x8x16xf32> to vector<8x16xf32>
    %381 = vector.extract_strided_slice %376 {offsets = [2, 0, 0], sizes = [1, 8, 16], strides = [1, 1, 1]} : vector<3x8x16xf32> to vector<1x8x16xf32>
    %382 = vector.shape_cast %381 : vector<1x8x16xf32> to vector<8x16xf32>
    %383 = tpu.concatenate %378, %380, %382 in 1 : vector<8x16xf32>, vector<8x16xf32>, vector<8x16xf32> -> vector<8x48xf32>
    %384 = arith.truncf %383 : vector<8x48xf32> to vector<8x48xbf16>
    %c2_110 = arith.constant 2 : index
    %c0_111 = arith.constant 0 : index
    %c0_112 = arith.constant 0 : index
    %385 = vector.load %arg6[%c2_110, %c0_111, %c0_112] : memref<3x48x48xbf16, #tpu.memory_space<vmem>>, vector<1x48x48xbf16>
    %386 = vector.shape_cast %385 : vector<1x48x48xbf16> to vector<48x48xbf16>
    %cst_113 = arith.constant dense<0.000000e+00> : vector<8x48xf32>
    %387 = tpu.matmul %384, %386, %cst_113 {dimension_numbers = #tpu.dot_dimension_numbers<[1], [0], [0], [1], [0, 0, 1, 1], [], []>} : vector<8x48xbf16>, vector<48x48xbf16>, vector<8x48xf32> -> vector<8x48xf32>
    %388 = vector.extract_strided_slice %304 {offsets = [4, 0], sizes = [1, 48], strides = [1, 1]} : vector<6x48xf32> to vector<1x48xf32>
    %389 = vector.broadcast %388 : vector<1x48xf32> to vector<8x48xf32>
    %390 = arith.addf %387, %389 : vector<8x48xf32>
    %391 = arith.addf %302, %390 : vector<8x48xf32>
    %392 = vector.extract_strided_slice %304 {offsets = [2, 0], sizes = [1, 48], strides = [1, 1]} : vector<6x48xf32> to vector<1x48xf32>
    %393 = vector.extract_strided_slice %304 {offsets = [3, 0], sizes = [1, 48], strides = [1, 1]} : vector<6x48xf32> to vector<1x48xf32>
    %cst_114 = arith.constant dense<0.000000e+00> : vector<8xf32>
    %394 = vector.multi_reduction <add>, %391, %cst_114 [1] : vector<8x48xf32> to vector<8xf32>
    %395 = vector.shape_cast %394 : vector<8xf32> to vector<8x1xf32>
    %cst_115 = arith.constant 4.800000e+01 : f32
    %396 = vector.broadcast %cst_115 : f32 to vector<8x1xf32>
    %397 = arith.divf %395, %396 : vector<8x1xf32>
    %398 = vector.broadcast %397 : vector<8x1xf32> to vector<8x48xf32>
    %399 = arith.subf %391, %398 : vector<8x48xf32>
    %400 = arith.mulf %399, %399 : vector<8x48xf32>
    %cst_116 = arith.constant dense<0.000000e+00> : vector<8xf32>
    %401 = vector.multi_reduction <add>, %400, %cst_116 [1] : vector<8x48xf32> to vector<8xf32>
    %402 = vector.shape_cast %401 : vector<8xf32> to vector<8x1xf32>
    %cst_117 = arith.constant 4.800000e+01 : f32
    %403 = vector.broadcast %cst_117 : f32 to vector<8x1xf32>
    %404 = arith.divf %402, %403 : vector<8x1xf32>
    %405 = vector.broadcast %397 : vector<8x1xf32> to vector<8x48xf32>
    %406 = arith.subf %391, %405 : vector<8x48xf32>
    %cst_118 = arith.constant 9.99999974E-6 : f32
    %407 = vector.broadcast %cst_118 : f32 to vector<8x1xf32>
    %408 = arith.addf %404, %407 : vector<8x1xf32>
    %409 = math.rsqrt %408 : vector<8x1xf32>
    %410 = vector.broadcast %409 : vector<8x1xf32> to vector<8x48xf32>
    %411 = arith.mulf %406, %410 : vector<8x48xf32>
    %412 = vector.broadcast %392 : vector<1x48xf32> to vector<8x48xf32>
    %413 = arith.mulf %411, %412 : vector<8x48xf32>
    %414 = vector.broadcast %393 : vector<1x48xf32> to vector<8x48xf32>
    %415 = arith.addf %413, %414 : vector<8x48xf32>
    %416 = arith.truncf %415 : vector<8x48xf32> to vector<8x48xbf16>
    %c2_119 = arith.constant 2 : index
    %c0_120 = arith.constant 0 : index
    %c0_121 = arith.constant 0 : index
    %417 = vector.load %arg8[%c2_119, %c0_120, %c0_121] : memref<3x48x192xbf16, #tpu.memory_space<vmem>>, vector<1x48x192xbf16>
    %418 = vector.shape_cast %417 : vector<1x48x192xbf16> to vector<48x192xbf16>
    %cst_122 = arith.constant dense<0.000000e+00> : vector<8x192xf32>
    %419 = tpu.matmul %416, %418, %cst_122 {dimension_numbers = #tpu.dot_dimension_numbers<[1], [0], [0], [1], [0, 0, 1, 1], [], []>} : vector<8x48xbf16>, vector<48x192xbf16>, vector<8x192xf32> -> vector<8x192xf32>
    %c2_123 = arith.constant 2 : index
    %c0_124 = arith.constant 0 : index
    %c0_125 = arith.constant 0 : index
    %420 = vector.load %arg9[%c2_123, %c0_124, %c0_125] : memref<3x1x192xf32, #tpu.memory_space<vmem>>, vector<1x1x192xf32>
    %421 = vector.shape_cast %420 : vector<1x1x192xf32> to vector<1x192xf32>
    %422 = vector.broadcast %421 : vector<1x192xf32> to vector<8x192xf32>
    %423 = arith.addf %419, %422 : vector<8x192xf32>
    %cst_126 = arith.constant 5.000000e-01 : f32
    %424 = vector.broadcast %cst_126 : f32 to vector<8x192xf32>
    %425 = arith.mulf %424, %423 : vector<8x192xf32>
    %cst_127 = arith.constant 4.471500e-02 : f32
    %426 = vector.broadcast %cst_127 : f32 to vector<8x192xf32>
    %427 = arith.mulf %426, %423 : vector<8x192xf32>
    %428 = arith.mulf %427, %423 : vector<8x192xf32>
    %429 = arith.mulf %428, %423 : vector<8x192xf32>
    %430 = arith.addf %423, %429 : vector<8x192xf32>
    %cst_128 = arith.constant 0.797884583 : f32
    %431 = vector.broadcast %cst_128 : f32 to vector<8x192xf32>
    %432 = arith.mulf %431, %430 : vector<8x192xf32>
    %433 = math.tanh %432 : vector<8x192xf32>
    %cst_129 = arith.constant 1.000000e+00 : f32
    %434 = vector.broadcast %cst_129 : f32 to vector<8x192xf32>
    %435 = arith.addf %434, %433 : vector<8x192xf32>
    %436 = arith.mulf %425, %435 : vector<8x192xf32>
    %437 = arith.truncf %436 : vector<8x192xf32> to vector<8x192xbf16>
    %c2_130 = arith.constant 2 : index
    %c0_131 = arith.constant 0 : index
    %c0_132 = arith.constant 0 : index
    %438 = vector.load %arg10[%c2_130, %c0_131, %c0_132] : memref<3x192x48xbf16, #tpu.memory_space<vmem>>, vector<1x192x48xbf16>
    %439 = vector.shape_cast %438 : vector<1x192x48xbf16> to vector<192x48xbf16>
    %cst_133 = arith.constant dense<0.000000e+00> : vector<8x48xf32>
    %440 = tpu.matmul %437, %439, %cst_133 {dimension_numbers = #tpu.dot_dimension_numbers<[1], [0], [0], [1], [0, 0, 1, 1], [], []>} : vector<8x192xbf16>, vector<192x48xbf16>, vector<8x48xf32> -> vector<8x48xf32>
    %441 = arith.addf %391, %440 : vector<8x48xf32>
    %442 = vector.extract_strided_slice %304 {offsets = [5, 0], sizes = [1, 48], strides = [1, 1]} : vector<6x48xf32> to vector<1x48xf32>
    %443 = vector.broadcast %442 : vector<1x48xf32> to vector<8x48xf32>
    %444 = arith.addf %441, %443 : vector<8x48xf32>
    %c0_134 = arith.constant 0 : index
    %c0_135 = arith.constant 0 : index
    %445 = vector.load %arg11[%c0_134, %c0_135] : memref<2x48xf32, #tpu.memory_space<vmem>>, vector<2x48xf32>
    %446 = vector.extract_strided_slice %445 {offsets = [0, 0], sizes = [1, 48], strides = [1, 1]} : vector<2x48xf32> to vector<1x48xf32>
    %447 = vector.extract_strided_slice %445 {offsets = [1, 0], sizes = [1, 48], strides = [1, 1]} : vector<2x48xf32> to vector<1x48xf32>
    %cst_136 = arith.constant dense<0.000000e+00> : vector<8xf32>
    %448 = vector.multi_reduction <add>, %444, %cst_136 [1] : vector<8x48xf32> to vector<8xf32>
    %449 = vector.shape_cast %448 : vector<8xf32> to vector<8x1xf32>
    %cst_137 = arith.constant 4.800000e+01 : f32
    %450 = vector.broadcast %cst_137 : f32 to vector<8x1xf32>
    %451 = arith.divf %449, %450 : vector<8x1xf32>
    %452 = vector.broadcast %451 : vector<8x1xf32> to vector<8x48xf32>
    %453 = arith.subf %444, %452 : vector<8x48xf32>
    %454 = arith.mulf %453, %453 : vector<8x48xf32>
    %cst_138 = arith.constant dense<0.000000e+00> : vector<8xf32>
    %455 = vector.multi_reduction <add>, %454, %cst_138 [1] : vector<8x48xf32> to vector<8xf32>
    %456 = vector.shape_cast %455 : vector<8xf32> to vector<8x1xf32>
    %cst_139 = arith.constant 4.800000e+01 : f32
    %457 = vector.broadcast %cst_139 : f32 to vector<8x1xf32>
    %458 = arith.divf %456, %457 : vector<8x1xf32>
    %459 = vector.broadcast %451 : vector<8x1xf32> to vector<8x48xf32>
    %460 = arith.subf %444, %459 : vector<8x48xf32>
    %cst_140 = arith.constant 9.99999974E-6 : f32
    %461 = vector.broadcast %cst_140 : f32 to vector<8x1xf32>
    %462 = arith.addf %458, %461 : vector<8x1xf32>
    %463 = math.rsqrt %462 : vector<8x1xf32>
    %464 = vector.broadcast %463 : vector<8x1xf32> to vector<8x48xf32>
    %465 = arith.mulf %460, %464 : vector<8x48xf32>
    %466 = vector.broadcast %446 : vector<1x48xf32> to vector<8x48xf32>
    %467 = arith.mulf %465, %466 : vector<8x48xf32>
    %468 = vector.broadcast %447 : vector<1x48xf32> to vector<8x48xf32>
    %469 = arith.addf %467, %468 : vector<8x48xf32>
    %470 = arith.truncf %469 : vector<8x48xf32> to vector<8x48xbf16>
    %c0_141 = arith.constant 0 : index
    %c0_142 = arith.constant 0 : index
    %471 = vector.load %arg12[%c0_141, %c0_142] : memref<48x128xbf16, #tpu.memory_space<vmem>>, vector<48x128xbf16>
    %cst_143 = arith.constant dense<0.000000e+00> : vector<8x128xf32>
    %472 = tpu.matmul %470, %471, %cst_143 {dimension_numbers = #tpu.dot_dimension_numbers<[1], [0], [0], [1], [0, 0, 1, 1], [], []>} : vector<8x48xbf16>, vector<48x128xbf16>, vector<8x128xf32> -> vector<8x128xf32>
    %c0_144 = arith.constant 0 : index
    %c0_145 = arith.constant 0 : index
    %473 = vector.load %arg13[%c0_144, %c0_145] : memref<8x128xf32, #tpu.memory_space<vmem>>, vector<8x128xf32>
    tpu.vector_store %arg13[%c0_144, %c0_145], %472 {strides = array<i32>} : memref<8x128xf32, #tpu.memory_space<vmem>>, vector<8x128xf32>,
    return
  }
  func.func @transform_0(%arg0: i32) -> (i32, i32) {
    %c0_i32 = arith.constant 0 : i32
    %c0_i32_0 = arith.constant 0 : i32
    return %arg0, %c0_i32 : i32, i32
  }
  func.func @transform_1(%arg0: i32) -> (i32, i32) {
    %c0_i32 = arith.constant 0 : i32
    %c0_i32_0 = arith.constant 0 : i32
    %c0_i32_1 = arith.constant 0 : i32
    return %c0_i32, %c0_i32_0 : i32, i32
  }
  func.func @transform_2(%arg0: i32) -> (i32, i32) {
    %c0_i32 = arith.constant 0 : i32
    %c0_i32_0 = arith.constant 0 : i32
    %c0_i32_1 = arith.constant 0 : i32
    return %c0_i32, %c0_i32_0 : i32, i32
  }
  func.func @transform_3(%arg0: i32) -> (i32, i32, i32) {
    %c0_i32 = arith.constant 0 : i32
    %c0_i32_0 = arith.constant 0 : i32
    %c0_i32_1 = arith.constant 0 : i32
    %c0_i32_2 = arith.constant 0 : i32
    return %c0_i32, %c0_i32_0, %c0_i32_1 : i32, i32, i32
  }
  func.func @transform_4(%arg0: i32) -> (i32, i32, i32) {
    %c0_i32 = arith.constant 0 : i32
    %c0_i32_0 = arith.constant 0 : i32
    %c0_i32_1 = arith.constant 0 : i32
    %c0_i32_2 = arith.constant 0 : i32
    return %c0_i32, %c0_i32_0, %c0_i32_1 : i32, i32, i32
  }
  func.func @transform_5(%arg0: i32) -> (i32, i32, i32) {
    %c0_i32 = arith.constant 0 : i32
    %c0_i32_0 = arith.constant 0 : i32
    %c0_i32_1 = arith.constant 0 : i32
    %c0_i32_2 = arith.constant 0 : i32
    return %c0_i32, %c0_i32_0, %c0_i32_1 : i32, i32, i32
  }
  func.func @transform_6(%arg0: i32) -> (i32, i32, i32) {
    %c0_i32 = arith.constant 0 : i32
    %c0_i32_0 = arith.constant 0 : i32
    %c0_i32_1 = arith.constant 0 : i32
    %c0_i32_2 = arith.constant 0 : i32
    return %c0_i32, %c0_i32_0, %c0_i32_1 : i32, i32, i32
  }
  func.func @transform_7(%arg0: i32) -> (i32, i32, i32) {
    %c0_i32 = arith.constant 0 : i32
    %c0_i32_0 = arith.constant 0 : i32
    %c0_i32_1 = arith.constant 0 : i32
    %c0_i32_2 = arith.constant 0 : i32
    return %c0_i32, %c0_i32_0, %c0_i32_1 : i32, i32, i32
  }
  func.func @transform_8(%arg0: i32) -> (i32, i32, i32) {
    %c0_i32 = arith.constant 0 : i32
    %c0_i32_0 = arith.constant 0 : i32
    %c0_i32_1 = arith.constant 0 : i32
    %c0_i32_2 = arith.constant 0 : i32
    return %c0_i32, %c0_i32_0, %c0_i32_1 : i32, i32, i32
  }
  func.func @transform_9(%arg0: i32) -> (i32, i32, i32) {
    %c0_i32 = arith.constant 0 : i32
    %c0_i32_0 = arith.constant 0 : i32
    %c0_i32_1 = arith.constant 0 : i32
    %c0_i32_2 = arith.constant 0 : i32
    return %c0_i32, %c0_i32_0, %c0_i32_1 : i32, i32, i32
  }
  func.func @transform_10(%arg0: i32) -> (i32, i32) {
    %c0_i32 = arith.constant 0 : i32
    %c0_i32_0 = arith.constant 0 : i32
    %c0_i32_1 = arith.constant 0 : i32
    return %c0_i32, %c0_i32_0 : i32, i32
  }
  func.func @transform_11(%arg0: i32) -> (i32, i32) {
    %c0_i32 = arith.constant 0 : i32
    %c0_i32_0 = arith.constant 0 : i32
    %c0_i32_1 = arith.constant 0 : i32
    return %c0_i32, %c0_i32_0 : i32, i32
  }
  func.func @transform_12(%arg0: i32) -> (i32, i32) {
    %c0_i32 = arith.constant 0 : i32
    %c0_i32_0 = arith.constant 0 : i32
    return %arg0, %c0_i32 : i32, i32
  }
}

</mosaic_0001>

<bundles_post_ra>
// kernel: tpu_custom_call.1
= control target key start
LH: loop header
LB: loop body
LE: loop exit
PB: predicated region body
PF: predicated region fallthrough
CT: control target
= control target key end

     0   :  { %s4830_s0 = inlined_call_operand.vmem [shape: s32[16,1], index: 0, kind: input, shape index: {}]   ;;  %s4831_s1 = inlined_call_operand.vmem [shape: f32[128,48], index: 1, kind: input, shape index: {}]   ;;  %s4832_s2 = inlined_call_operand.vmem [shape: f32[8,48], index: 2, kind: input, shape index: {}]   ;;  %s4833_s3 = inlined_call_operand.vmem [shape: bf16[3,48,144], index: 3, kind: input, shape index: {}]   ;;  %s4834_s4 = inlined_call_operand.vmem [shape: f32[3,1,144], index: 4, kind: input, shape index: {}]   ;;  %s4835_s5 = inlined_call_operand.vmem [shape: bf16[3,48,48], index: 5, kind: input, shape index: {}]   ;;  %s4836_s6 = inlined_call_operand.vmem [shape: f32[3,6,48], index: 6, kind: input, shape index: {}]   ;;  %s4837_s7 = inlined_call_operand.vmem [shape: bf16[3,48,192], index: 7, kind: input, shape index: {}]   ;;  %s4838_s8 = inlined_call_operand.vmem [shape: f32[3,1,192], index: 8, kind: input, shape index: {}]   ;;  %s4839_s9 = inlined_call_operand.vmem [shape: bf16[3,192,48], index: 9, kind: input, shape index: {}]   ;;  %s4840_s10 = inlined_call_operand.vmem [shape: f32[2,48], index: 10, kind: input, shape index: {}]   ;;  %s4841_s11 = inlined_call_operand.vmem [shape: bf16[48,128], index: 11, kind: input, shape index: {}]   ;;  %s4842_s12 = inlined_call_operand.hbm [shape: f32[16,128], index: 12, kind: output, shape index: {}]  }
   0x1   :  { %4855 = sst [smem:[#allocation8_spill]] %s4830_s0 }
   0x2   :  { %17 = vsyncpa [#allocation3], 0 }
   0x3   :  { %19 = vsyncpa [#allocation3 + $0x1], 0  ;;  %s4019_s21 = smov 0   ;;  %s4021_s22 = smov 0  }
   0x4   :  { %s4023_s23 = smov 0   ;;  %s4025_s24 = smov 0  }
   0x5 LB: > { %4856 = sst [smem:[#allocation5_spill]] %s3936_s23  ;;  %s4040_s25 = sadd.s32 4294967295, %s3940_s24   ;;  %s3940_s24 = sphi %s4025_s24, %s4867_s24   ;;  %s3936_s23 = sphi %s4023_s23, %s4869_s23   ;;  %s3932_s22 = sphi %s4021_s22, %s4871_s22   ;;  %s3928_s21 = sphi %s4019_s21, %s4870_s21  }
   0x6   : > { %s3170_s26 = sadd.s32 4294967294, %s3940_s24   ;;  %s4044_s27 = sadd.s32 1, %s3940_s24  }
   0x7   : > { %4857 = sst [smem:[#allocation6_spill]] %s4044_s27  ;;  %s289_s28 = sadd.s32 1, %s3936_s23 }
   0x8   : > { %s286_s29 = ssub.s32 %s3940_s24, %s4044_s27  ;;  %p299_p0 = scmp.ne.s32.totalorder %s3936_s23, %s3932_s22 }
   0x9   : > { %p287_p1 = scmp.eq.s32.totalorder %s286_s29, 0  ;;  %p300_p2 = scmp.eq.s32.totalorder %s4040_s25, 1 }
   0xa   : > { %p305_p3 = scmp.ne.s32.totalorder %s3932_s22, %s3928_s21  ;;  %p306_p4 = scmp.eq.s32.totalorder %s3170_s26, 1 }
   0xb   : > { %s4055_s30 = scalar_select %p287_p1, %s3936_s23, %s289_s28  }
   0xc   : > { %p4057_p5 = por %p300_p2, %p299_p0  ;;  %p4061_p6 = por %p306_p4, %p305_p3 }
   0xd   : > { %4858 = sst [smem:[#allocation7_spill]] %s4055_s30  ;;  %p3173_p7 = scmp.ge.s32.totalorder %s3940_s24, 1 }
   0xe   : > { %p364_p8 = scmp.lt.s32.totalorder %s3940_s24, 3 }
  0x10   : > { %p365_p9 = pnand %p3173_p7, %p364_p8 }
  0x11   : > { %p405_p10 = scmp.lt.s32.totalorder (!%p365_p9), %s4040_s25, 1  ;;  %v419_v0 = vld [vmem:[%s4831_s1] sm:$0xff] (!%p365_p9)  ;;  %v420_v1 = vld [vmem:[%s4831_s1 + $0x8] sm:$0xff] (!%p365_p9)  ;;  %v421_v2 = vld [vmem:[%s4831_s1 + $0x10] sm:$0xff] (!%p365_p9)  ;;  %v3942_v3 = vmov (!%p365_p9), 0   ;;  %v3943_v4 = vmov (!%p365_p9), 0.0|0.0   ;;  %v411_v28 = vlaneseq (!%p365_p9) }
  0x12   : > { %368 = sbr.rel (%p365_p9) target bundleno = 8803 (0x2263), region = 68  ;;  %3713 = vset.pattern.permute.xlu0 (!%p365_p9), %v3942_v3  ;;  %3639 = vmatprep.subr.bf16.mxu0 (!%p365_p9), %v3943_v4  ;;  %v3640_v5 = vpack.c.bf16 (!%p365_p9), %v420_v1, %v419_v0  ;;  %v422_v6 = vld [vmem:[%s4831_s1 + $0x18] sm:$0xff] (!%p365_p9)  ;;  %v423_v8 = vld [vmem:[%s4831_s1 + $0x20] sm:$0xff] (!%p365_p9)  ;;  %v424_v9 = vld [vmem:[%s4831_s1 + $0x28] sm:$0xff] (!%p365_p9)  ;;  %s4861_s0 = sld [smem:[#allocation8_spill]] (!%p365_p9)  ;;  %vm3944_vm0 = vmmov (!%p365_p9), 0  }
  0x13   : > { %621 = vmatprep.mubr.bf16.mxu1 (!%p365_p9), %v3942_v3  ;;  %v3643_v7 = vpack.c.bf16 (!%p365_p9), %v422_v6, %v421_v2  ;;  %v425_v11 = vld [vmem:[%s4831_s1 + $0x30] sm:$0xff] (!%p365_p9)  ;;  %v426_v12 = vld [vmem:[%s4831_s1 + $0x38] sm:$0xff] (!%p365_p9)  ;;  %v3646_v13 = vpack.c.bf16 (!%p365_p9), %v424_v9, %v423_v8  ;;  %v3945_v14 = vmov (!%p365_p9), 0.0   ;;  %v427_v15 = vld [vmem:[%s4831_s1 + $0x40] sm:$0xff] (!%p365_p9)  ;;  %v4125_v29 = vand.u32 (!%p365_p9), 127, %v411_v28  ;;  %s4852_s28 = smov (!%p365_p9), 112  }
  0x14   : > { %3641 = vmatpush3.bf16.msra.mxu0 (!%p365_p9), %v3640_v5  ;;  %3488 = vmatprep.mubr.msk.f32.mxu0 (!%p365_p9), %vm3944_vm0, %v3945_v14  ;;  %v428_v16 = vld [vmem:[%s4831_s1 + $0x48] sm:$0xff] (!%p365_p9)  ;;  %v3649_v17 = vpack.c.bf16 (!%p365_p9), %v426_v12, %v425_v11  ;;  %v429_v18 = vld [vmem:[%s4831_s1 + $0x50] sm:$0xff] (!%p365_p9)  ;;  %v430_v19 = vld [vmem:[%s4831_s1 + $0x58] sm:$0xff] (!%p365_p9)  ;;  %v3946_v31 = vmov (!%p365_p9), 1.0   ;;  %vm512_vm2 = vcmask (!%p365_p9), 392192   ;;  %v4158_v51 = vshrl.u32 (!%p365_p9), %v411_v28, 7 }
  0x15   : > { %3642 = vmatprep.subr.bf16.mxu0 (!%p365_p9), %v3943_v4  ;;  %v3652_v20 = vpack.c.bf16 (!%p365_p9), %v428_v16, %v427_v15  ;;  %v431_v21 = vld [vmem:[%s4831_s1 + $0x60] sm:$0xff] (!%p365_p9)  ;;  %v432_v22 = vld [vmem:[%s4831_s1 + $0x68] sm:$0xff] (!%p365_p9)  ;;  %v3655_v23 = vpack.c.bf16 (!%p365_p9), %v430_v19, %v429_v18  ;;  %v433_v24 = vld [vmem:[%s4831_s1 + $0x70] sm:$0xff] (!%p365_p9)  ;;  %s4850_s30 = smov (!%p365_p9), 80   ;;  %vm647_vm3 = vcmask (!%p365_p9), 130048   ;;  %vm792_vm5 = vcmask (!%p365_p9), 64512  }
  0x16   : > { %v434_v25 = vld [vmem:[%s4831_s1 + $0x78] sm:$0xff] (!%p365_p9)  ;;  %v3658_v26 = vpack.c.bf16 (!%p365_p9), %v432_v22, %v431_v21  ;;  %v505_v32 = vld [vmem:[%s4832_s2] sm:$0xff] (!%p365_p9)  ;;  %v4161_v52 = vsub.s32 (!%p365_p9), 0, %v4158_v51  ;;  %v4169_v54 = vsub.s32 (!%p365_p9), 1, %v4158_v51  ;;  %vm509_vm4 = vcmp.le.s32.totalorder (!%p365_p9), %v4125_v29, %v4158_v51  ;;  %s4846_s20 = smov (!%p365_p9), 16   ;;  %s4862_s17 = smov (!%p365_p9), 80  }
  0x17   : > { %v3661_v27 = vpack.c.bf16 (!%p365_p9), %v434_v25, %v433_v24  ;;  %v3714_v42 = vld [vmem:[%s4833_s3 + $0x4] ss:$8 sps:$4 sm:$0xff] (!%p365_p9)   ;;  %v3716_v43 = vld [vmem:[%s4833_s3] ss:$8 sps:$4 sm:$0xff] (!%p365_p9)   ;;  %v3717_v44 = vld [vmem:[%s4833_s3 + $0x14] ss:$8 sps:$4 sm:$0xff] (!%p365_p9)  }
  0x18   : > { %3644 = vmatpush3.bf16.msra.mxu0 (!%p365_p9), %v3643_v7  ;;  %589 = vmatprep.subr.bf16.mxu1 (!%p365_p9), %v3714_v42  ;;  %v3719_v45 = vld [vmem:[%s4833_s3 + $0x10] ss:$8 sps:$4 sm:$0xff] (!%p365_p9)   ;;  %v3720_v46 = vld [vmem:[%s4833_s3 + $0x24] ss:$8 sps:$4 sm:$0xff] (!%p365_p9)   ;;  %v3722_v47 = vld [vmem:[%s4833_s3 + $0x20] ss:$8 sps:$4 sm:$0xff] (!%p365_p9)  }
  0x19   : > { %s406_s29 = scalar_select %p405_p10, %s4040_s25, 1  ;;  %3645 = vmatprep.subr.bf16.mxu0 %v3943_v4  ;;  %590 = vmatpush1.bf16.msra.mxu1 %v3716_v43  ;;  %v4166_v53 = vld [vmem:[%s4836_s6] sm:$0x3f]  ;;  %v3950_v18 = vmov -1e+30   ;;  %vm835_vm6 = vcmask 1043456  }
  0x1a   : > { %591 = vmatprep.subr.bf16.mxu1 %v3717_v44  ;;  %v530_v55 = vrot.slane %v4166_v53, %v4161_v52  ;;  %v535_v58 = vrot.slane %v4166_v53, %v4169_v54  ;;  %v4181_v62 = vld [vmem:[%s4834_s4] sm:$0x3]  ;;  %v4209_v19 = vsel %vm509_vm4, 0.0, %v3950_v18  ;;  %vm985_vm7 = vcmask 261120   ;;  %s4864_s23 = smov 16   ;;  %s4865_s19 = smov 96  }
  0x1b   : > { %s3175_s15 = sshll.u32 %s406_s29, 3  ;;  %v549_v63 = vrot.slane %v4181_v62, %v4161_v52  ;;  %s4853_s29 = smov 96   ;;  %vm1292_vm8 = vcmask 523264  }
  0x1c   : > { %s408_s26 = scalar_lea.vmem %s4861_s0, %s3175_s15  ;;  %3647 = vmatpush3.bf16.msra.mxu0 %v3646_v13  ;;  %s4848_s15 = smov 32  }
  0x1d   : > { %v410_v10 = vld [vmem:[%s408_s26] sm:$0xff]  ;;  %3648 = vmatprep.subr.bf16.mxu0 %v3943_v4  ;;  %592 = vmatpush1.bf16.msra.mxu1 %v3719_v45  ;;  %s3384_s16 = sshll.u32 %s4040_s25, 7  ;;  %s3953_s25 = smov [#allocation2]  }
  0x1e   : > { %414 = vperm.xlu0 %3713, %v410_v10   ;;  %593 = vmatprep.subr.bf16.mxu1 %v3720_v46  ;;  %s3882_s18 = sshll.u32 %s3953_s25, 4  ;;  %s3883_s18 = int_to_ptr.vmem [resolvable:$false] %s3882_s18 }
  0x20   : > { %3650 = vmatpush3.bf16.msra.mxu0 %v3649_v17 }
  0x21   : > { %3651 = vmatprep.subr.bf16.mxu0 %v3943_v4  ;;  %594 = vmatpush1.bf16.msra.mxu1 %v3722_v47 }
  0x22   : > { %3491 = vmatprep.subr.bf16.mxu1 %v3945_v14 }
  0x24   : > { %3653 = vmatpush3.bf16.msra.mxu0 %v3652_v20 }
  0x25   : > { %3654 = vmatprep.subr.bf16.mxu0 %v3943_v4 }
  0x28   : > { %3656 = vmatpush3.bf16.msra.mxu0 %v3655_v23 }
  0x29   : > { %3657 = vmatprep.subr.bf16.mxu0 %v3943_v4 }
  0x2c   : > { %3659 = vmatpush3.bf16.msra.mxu0 %v3658_v26 }
  0x2d   : > { %3660 = vmatprep.subr.bf16.mxu0 %v3943_v4 }
  0x30   : > { %3662 = vmatpush3.bf16.msra.mxu0 %v3661_v27 }
  0x31   : > { %3515 = vmatprep.subr.bf16.mxu0 %v3945_v14 }
  0x9d   : > { %v415_v30 = vpop.permute.xlu0 %414 }
  0x9e   : > { %vm416_vm1 = vcmp.eq.s32.totalorder %v415_v30, %v4125_v29 }
  0x9f   : > { %3489 = vmatmul.mubr.msk.f32.vlgmr.msra.gmra.mrb[0].mxu0 %vm416_vm1, %v3946_v31 }
  0xa0   : > { %3517 = vmatprep.mubr.msk.bf16.mxu0 %vm3944_vm0, %v3945_v14 }
 0x172   : > { %v501_v33 = vpop.f32.mrb[0].mxu0 }
 0x173   : > { %v4133_v34 = vadd.f32 %v505_v32, %v501_v33  ;;  %v3490_v35 = vpop.f32.mrb[1].mxu0 }
 0x175   : > { %v513_v36 = vsel %vm512_vm2, %v4133_v34, 0.0 }
 0x176   : > { %514 = vadd.xlane.f32.xlu0 %v513_v36 }
 0x203   : > { %v515_v37 = vpop.xlane.xlu0 %514 }
 0x204   : > { %v517_v38 = vmul.f32 0.020833334, %v515_v37 }
 0x206   : > { %v518_v39 = vsub.f32 %v4133_v34, %v517_v38 }
 0x208   : > { %v519_v40 = vmul.f32 %v518_v39, %v518_v39 }
 0x20a   : > { %v520_v41 = vsel %vm512_vm2, %v519_v40, 0.0 }
 0x20b   : > { %521 = vadd.xlane.f32.xlu1 %v520_v41 }
 0x298   : > { %v522_v48 = vpop.xlane.xlu1 %521 }
 0x299   : > { %v523_v49 = vmul.f32 0.020833334, %v522_v48 }
 0x29b   : > { %v524_v50 = vadd.f32 1e-05, %v523_v49 }
 0x29d   : > { %3816 = vrsqrt.f32 %v524_v50 }
 0x2a7   : > { %v3817_v56 = vpop.eup %3816 }
 0x2a8   : > { %v526_v57 = vmul.f32 %v3817_v56, %v518_v39  ;;  %v553_v39 = vrot.slane %v4181_v62, %v4169_v54 }
 0x2aa   : > { %v531_v59 = vmul.f32 %v530_v55, %v526_v57 }
 0x2ac   : > { %v536_v60 = vadd.f32 %v535_v58, %v531_v59 }
 0x2ae   : > { %v537_v61 = vpack.c.bf16 %v536_v60, %v536_v60 }
 0x2b0   : > { %3184 = vmatmul.mubr.msk.bf16.vlgmr.msra.gmra.mrb[0].mxu1 %vm512_vm2, %v537_v61 }
 0x2b1   : > { %3493 = vmatprep.mubr.msk.bf16.mxu1 %vm3944_vm0, %v3945_v14 }
 0x383   : > { %v623_v0 = vpop.f32.mrb[0].mxu1 }
 0x384   : > { %v624_v1 = vadd.f32 %v623_v0, %v549_v63  ;;  %v4185_v2 = vpop.f32.mrb[1].mxu1 }
 0x385   : > { %v627_v4 = vpop.f32.mrb[2].mxu1  ;;  %v626_v40 = vadd.f32 %v4185_v2, %v553_v39 }
 0x386   : > { %v628_v5 = vpop.f32.mrb[3].mxu1  ;;  %631 = vrot.lane.b32.xlu1 %v624_v1, %s4852_s28  ;;  %v641_v6 = vpack.c.bf16 %v624_v1, %v624_v1 }
 0x38a   : > { %634 = vrot.lane.b32.xlu1 %v624_v1, %s4853_s29 }
 0x38e   : > { %645 = vrot.lane.b32.xlu1 %v641_v6, %s4850_s30 }
 0x3f8   : > { %v632_v7 = vpop.permute.xlu1 %631 }
 0x3f9   : > { %v642_v8 = vpack.c.bf16 %v632_v7, %v632_v7 }
 0x3fb   : > { %695 = vrot.lane.b32.xlu1 %v642_v8, %s4850_s30 }
 0x3fc   : > { %v635_v9 = vpop.permute.xlu1 %634 }
 0x3fd   : > { %v643_v10 = vpack.c.bf16 %v635_v9, %v635_v9 }
 0x3ff   : > { %744 = vrot.lane.b32.xlu1 %v643_v10, %s4850_s30 }
 0x400   : > { %v646_v11 = vpop.permute.xlu1 %645 }
 0x401   : > { %v652_v12 = vsel %vm647_vm3, %v646_v11, 0 }
 0x402   : > { %3492 = vmatpush3.bf16.xpose.msra.mxu1 %v652_v12 }
 0x403   : > { %3497 = vmatprep.subr.bf16.mxu1 %v3945_v14 }
 0x409   : > { %3494 = vmatmul.mubr.msk.bf16.vlgmr.msra.gmra.mrb[4].mxu1 %vm647_vm3, %v641_v6 }
 0x40a   : > { %3499 = vmatprep.mubr.msk.bf16.mxu1 %vm3944_vm0, %v3945_v14 }
 0x46d   : > { %v696_v13 = vpop.permute.xlu1 %695 }
 0x46e   : > { %v701_v15 = vsel %vm647_vm3, %v696_v13, 0 }
 0x46f   : > { %3498 = vmatpush3.bf16.xpose.msra.mxu1 %v701_v15 }
 0x470   : > { %3503 = vmatprep.subr.bf16.mxu1 %v3945_v14 }
 0x471   : > { %v745_v16 = vpop.permute.xlu1 %744 }
 0x472   : > { %v750_v17 = vsel %vm647_vm3, %v745_v16, 0 }
 0x476   : > { %3500 = vmatmul.mubr.msk.bf16.vlgmr.msra.gmra.mrb[8].mxu1 %vm647_vm3, %v642_v8 }
 0x477   : > { %3504 = vmatpush3.bf16.xpose.msra.mxu1 %v750_v17  ;;  %3505 = vmatprep.mubr.msk.bf16.mxu1 %vm3944_vm0, %v3945_v14 }
 0x478   : > { %3509 = vmatprep.subr.bf16.mxu1 %v3945_v14 }
 0x47e   : > { %3506 = vmatmul.mubr.msk.bf16.vlgmr.msra.gmra.mrb[12].mxu1 %vm647_vm3, %v643_v10 }
 0x47f   : > { %3511 = vmatprep.mubr.msk.bf16.mxu1 %vm3944_vm0, %v3945_v14 }
 0x4dc   : > { %v688_v20 = vpop.f32.mrb[4].mxu1 }
 0x4dd   : > { %v689_v21 = vadd.f32 %v688_v20, %v4209_v19  ;;  %v3495_v22 = vpop.f32.mrb[5].mxu1 }
 0x4de   : > { %v691_v23 = vpop.f32.mrb[6].mxu1 }
 0x4df   : > { %v3496_v24 = vpop.f32.mrb[7].mxu1  ;;  %v793_v25 = vsel %vm792_vm5, %v689_v21, -inf  ;;  %v3723_v23 = vld [vmem:[%s4835_s5] sm:$0xff]  }
 0x4e0   : > { %794 = vmax.xlane.f32.xlu0 %v793_v25  ;;  %v3724_v24 = vld [vmem:[%s4835_s5 + $0x8] sm:$0xff]   ;;  %v3725_v25 = vld [vmem:[%s4835_s5 + $0x10] sm:$0xff]  }
 0x549   : > { %v737_v26 = vpop.f32.mrb[8].mxu1 }
 0x54a   : > { %v738_v27 = vadd.f32 %v737_v26, %v4209_v19  ;;  %v3501_v28 = vpop.f32.mrb[9].mxu1 }
 0x54b   : > { %v740_v30 = vpop.f32.mrb[10].mxu1 }
 0x54c   : > { %v3502_v31 = vpop.f32.mrb[11].mxu1  ;;  %v796_v29 = vsel %vm792_vm5, %v738_v27, -inf }
 0x54d   : > { %797 = vmax.xlane.f32.xlu1 %v796_v29 }
 0x551   : > { %v786_v32 = vpop.f32.mrb[12].mxu1 }
 0x552   : > { %v787_v33 = vadd.f32 %v786_v32, %v4209_v19  ;;  %v3507_v35 = vpop.f32.mrb[13].mxu1 }
 0x553   : > { %v789_v36 = vpop.f32.mrb[14].mxu1 }
 0x554   : > { %v3508_v37 = vpop.f32.mrb[15].mxu1  ;;  %v799_v38 = vsel %vm792_vm5, %v787_v33, -inf }
 0x555   : > { %800 = vmax.xlane.f32.xlu0 %v799_v38 }
 0x55e   : > { %830 = vrot.lane.b32.xlu1 %v641_v6, %s4848_s15 }
 0x56b   : > { %638 = vrot.lane.b32.xlu0 %v626_v40, %s4853_s29  ;;  %v4258_v40 = vsub.s32 4, %v4158_v51 }
 0x56d   : > { %v795_v41 = vpop.xlane.xlu0 %794 }
 0x56e   : > { %v802_v42 = vsub.f32 %v689_v21, %v795_v41  ;;  %v997_v41 = vrot.slane %v4166_v53, %v4258_v40 }
 0x570   : > { %v805_v43 = vmul.f32 1.442695, %v802_v42 }
 0x572   : > { %3818 = vpow2.f32 %v805_v43 }
 0x57c   : > { %v3819_v44 = vpop.eup %3818 }
 0x57d   : > { %v811_v45 = vsel %vm792_vm5, %v3819_v44, 0.0 }
 0x58a   : > { %812 = vadd.xlane.f32.xlu0 %v811_v45 }
 0x5a0   : > { %879 = vrot.lane.b32.xlu0 %v642_v8, %s4848_s15 }
 0x5da   : > { %v798_v46 = vpop.xlane.xlu1 %797 }
 0x5db   : > { %v803_v47 = vsub.f32 %v738_v27, %v798_v46 }
 0x5dd   : > { %v807_v48 = vmul.f32 1.442695, %v803_v47 }
 0x5de   : > { %v831_v49 = vpop.permute.xlu1 %830 }
 0x5df   : > { %3820 = vpow2.f32 %v807_v48  ;;  %v837_v50 = vsel %vm835_vm6, %v831_v49, 0 }
 0x5e0   : > { %3510 = vmatpush3.bf16.msra.mxu1 %v837_v50 }
 0x5e1   : > { %3521 = vmatprep.subr.bf16.mxu1 %v3945_v14 }
 0x5e2   : > { %v801_v55 = vpop.xlane.xlu0 %800 }
 0x5e3   : > { %v804_v56 = vsub.f32 %v787_v33, %v801_v55 }
 0x5e5   : > { %v809_v57 = vmul.f32 1.442695, %v804_v56 }
 0x5e6   : > { %v639_v62 = vpop.permute.xlu0 %638 }
 0x5e7   : > { %3822 = vpow2.f32 %v809_v57  ;;  %v829_v63 = vpack.c.bf16 %v639_v62, %v639_v62  ;;  %v3732_v62 = vld [vmem:[%s4837_s7 + $0x20] ss:$8 sps:$4 sm:$0xff]  }
 0x5e9   : > { %v3821_v58 = vpop.eup %3820 }
 0x5ea   : > { %v814_v59 = vsel %vm792_vm5, %v3821_v58, 0.0 }
 0x5eb   : > { %815 = vadd.xlane.f32.xlu1 %v814_v59  ;;  %v3731_v59 = vld [vmem:[%s4837_s7 + $0x14] ss:$8 sps:$4 sm:$0xff]  }
 0x5f1   : > { %v3823_v60 = vpop.eup %3822 }
 0x5f2   : > { %v817_v61 = vsel %vm792_vm5, %v3823_v60, 0.0 }
 0x5f3   : > { %818 = vadd.xlane.f32.xlu1 %v817_v61  ;;  %v3734_v61 = vld [vmem:[%s4837_s7 + $0x24] ss:$8 sps:$4 sm:$0xff]  }
 0x604   : > { %928 = vrot.lane.b32.xlu1 %v829_v63, %s4848_s15  ;;  %v3735_v63 = vld [vmem:[%s4839_s9] sm:$0xff]  }
 0x617   : > { %v813_v0 = vpop.xlane.xlu0 %812 }
 0x618   : > { %3824 = vrcp.f32 %v813_v0  ;;  %v3736_v0 = vld [vmem:[%s4839_s9 + $0x8] sm:$0xff]  }
 0x61b   : > { %v880_v1 = vpop.permute.xlu0 %879 }
 0x61c   : > { %v885_v2 = vsel %vm835_vm6, %v880_v1, 0  ;;  %v3737_v1 = vld [vmem:[%s4839_s9 + $0x10] sm:$0xff]  }
 0x61d   : > { %3516 = vmatpush3.bf16.msra.mxu0 %v885_v2  ;;  %v3738_v2 = vld [vmem:[%s4839_s9 + $0x18] sm:$0xff]  }
 0x61e   : > { %1296 = vmatprep.subr.bf16.mxu0 %v3942_v3 }
 0x622   : > { %v3825_v4 = vpop.eup %3824 }
 0x623   : > { %v823_v5 = vmul.f32 %v3825_v4, %v3819_v44 }
 0x625   : > { %v826_v6 = vpack.c.bf16 %v823_v5, %v823_v5 }
 0x627   : > { %3512 = vmatmul.mubr.msk.bf16.vlgmr.msra.gmra.mrb[16].mxu1 %vm792_vm5, %v826_v6 }
 0x628   : > { %3523 = vmatprep.mubr.msk.bf16.mxu1 %vm3944_vm0, %v3945_v14 }
 0x678   : > { %v816_v7 = vpop.xlane.xlu1 %815 }
 0x679   : > { %3826 = vrcp.f32 %v816_v7  ;;  %v4304_v7 = vsub.s32 2, %v4158_v51 }
 0x680   : > { %v819_v8 = vpop.xlane.xlu1 %818 }
 0x681   : > { %3828 = vrcp.f32 %v819_v8  ;;  %v4307_v8 = vsub.s32 3, %v4158_v51 }
 0x683   : > { %v3827_v9 = vpop.eup %3826 }
 0x684   : > { %v824_v10 = vmul.f32 %v3827_v9, %v3821_v58  ;;  %v929_v11 = vpop.permute.xlu1 %928  ;;  %v3728_v58 = vld [vmem:[%s4837_s7 + $0x4] ss:$8 sps:$4 sm:$0xff]   ;;  %v1076_v9 = vrot.slane %v4166_v53, %v4304_v7 }
 0x685   : > { %v934_v12 = vsel %vm835_vm6, %v929_v11, 0 }
 0x686   : > { %3522 = vmatpush3.bf16.msra.mxu1 %v934_v12  ;;  %v827_v13 = vpack.c.bf16 %v824_v10, %v824_v10  ;;  %v1081_v12 = vrot.slane %v4166_v53, %v4307_v8 }
 0x687   : > { %3527 = vmatprep.subr.bf16.mxu1 %v3945_v14 }
 0x688   : > { %3518 = vmatmul.mubr.msk.bf16.vlgmr.msra.gmra.mrb[4].mxu0 %vm792_vm5, %v827_v13 }
 0x689   : > { %1297 = vmatpush1.bf16.msra.mxu0 %v3735_v63 }
 0x68a   : > { %1298 = vmatprep.subr.bf16.mxu0 %v3942_v3 }
 0x68b   : > { %v3829_v15 = vpop.eup %3828 }
 0x68c   : > { %v825_v16 = vmul.f32 %v3829_v15, %v3823_v60  ;;  %v3729_v60 = vld [vmem:[%s4837_s7 + $0x10] ss:$8 sps:$4 sm:$0xff]  }
 0x68d   : > { %1299 = vmatpush1.bf16.msra.mxu0 %v3736_v0 }
 0x68e   : > { %v828_v17 = vpack.c.bf16 %v825_v16, %v825_v16  ;;  %1300 = vmatprep.subr.bf16.mxu0 %v3942_v3 }
 0x690   : > { %3524 = vmatmul.mubr.msk.bf16.vlgmr.msra.gmra.mrb[20].mxu1 %vm792_vm5, %v828_v17  ;;  %v3739_v17 = vld [vmem:[%s4839_s9 + $0x20] sm:$0xff]  }
 0x691   : > { %3533 = vmatprep.mubr.msk.bf16.mxu1 %vm3944_vm0, %v3945_v14  ;;  %3528 = vmatpush3.bf16.msra.mxu1 %v3723_v23  ;;  %v3744_v23 = vld [vmem:[%s4839_s9 + $0x48] sm:$0xff]  }
 0x692   : > { %3529 = vmatprep.subr.bf16.mxu1 %v3945_v14  ;;  %1301 = vmatpush1.bf16.msra.mxu0 %v3737_v1 }
 0x693   : > { %1302 = vmatprep.subr.bf16.mxu0 %v3942_v3 }
 0x695   : > { %3530 = vmatpush3.bf16.msra.mxu1 %v3724_v24  ;;  %v3745_v24 = vld [vmem:[%s4839_s9 + $0x50] sm:$0xff]  }
 0x696   : > { %3531 = vmatprep.subr.bf16.mxu1 %v3945_v14  ;;  %1303 = vmatpush1.bf16.msra.mxu0 %v3738_v2 }
 0x697   : > { %1304 = vmatprep.subr.bf16.mxu0 %v3942_v3 }
 0x699   : > { %3532 = vmatpush3.bf16.msra.mxu1 %v3725_v25  ;;  %v3746_v25 = vld [vmem:[%s4839_s9 + $0x58] sm:$0xff]  }
 0x69a   : > { %1135 = vmatprep.subr.bf16.mxu1 %v3728_v58  ;;  %1305 = vmatpush1.bf16.msra.mxu0 %v3739_v17  ;;  %v3753_v17 = vld [vmem:[%s4833_s3 + $0x50] ss:$8 sps:$4 sm:$0xff]  }
 0x69b   : > { %1306 = vmatprep.subr.bf16.mxu0 %v3942_v3 }
 0x6fa   : > { %v873_v18 = vpop.f32.mrb[16].mxu1 }
 0x6fb   : > { %v3513_v20 = vpop.f32.mrb[17].mxu1 }
 0x6fc   : > { %v876_v21 = vpop.f32.mrb[18].mxu1  ;;  %v3741_v20 = vld [vmem:[%s4839_s9 + $0x30] sm:$0xff]  }
 0x6fd   : > { %v3514_v22 = vpop.f32.mrb[19].mxu1  ;;  %v3742_v21 = vld [vmem:[%s4839_s9 + $0x38] sm:$0xff]  }
 0x6fe   : > { %v3743_v22 = vld [vmem:[%s4839_s9 + $0x40] sm:$0xff]  }
 0x75b   : > { %v921_v26 = vpop.f32.mrb[4].mxu0 }
 0x75c   : > { %977 = vrot.lane.b32.xlu1 %v921_v26, %s4846_s20  ;;  %v3519_v27 = vpop.f32.mrb[5].mxu0  ;;  %v1090_v26 = vld [vmem:[%s4838_s8] sm:$0x3]  ;;  %s4863_s20 = smov 32  }
 0x75d   : > { %v924_v28 = vpop.f32.mrb[6].mxu0  ;;  %v1095_v27 = vrot.slane %v1090_v26, %v4161_v52 }
 0x75e   : > { %v3520_v30 = vpop.f32.mrb[7].mxu0  ;;  %v1099_v28 = vrot.slane %v1090_v26, %v4169_v54 }
 0x763   : > { %v970_v31 = vpop.f32.mrb[20].mxu1 }
 0x764   : > { %v3525_v29 = vpop.f32.mrb[21].mxu1  ;;  %981 = vrot.lane.b32.xlu1 %v970_v31, %s4848_s15 }
 0x765   : > { %v973_v32 = vpop.f32.mrb[22].mxu1 }
 0x766   : > { %v3526_v33 = vpop.f32.mrb[23].mxu1 }
 0x7ce   : > { %v978_v35 = vpop.permute.xlu1 %977 }
 0x7cf   : > { %v984_v36 = vsel %vm647_vm3, %v873_v18, %v978_v35  ;;  %v3740_v18 = vld [vmem:[%s4839_s9 + $0x28] sm:$0xff]  }
 0x7d0   : > { %1307 = vmatpush1.bf16.msra.mxu0 %v3740_v18 }
 0x7d1   : > { %1308 = vmatprep.subr.bf16.mxu0 %v3942_v3 }
 0x7d4   : > { %1309 = vmatpush1.bf16.msra.mxu0 %v3741_v20 }
 0x7d5   : > { %1310 = vmatprep.subr.bf16.mxu0 %v3942_v3 }
 0x7d6   : > { %v982_v37 = vpop.permute.xlu1 %981 }
 0x7d7   : > { %v986_v38 = vsel %vm985_vm7, %v984_v36, %v982_v37 }
 0x7d8   : > { %v987_v39 = vpack.c.bf16 %v986_v38, %v986_v38  ;;  %1311 = vmatpush1.bf16.msra.mxu0 %v3742_v21 }
 0x7d9   : > { %1312 = vmatprep.subr.bf16.mxu0 %v3942_v3 }
 0x7da   : > { %3534 = vmatmul.mubr.msk.bf16.vlgmr.msra.gmra.mrb[24].mxu1 %vm512_vm2, %v987_v39 }
 0x7db   : > { %1167 = vmatprep.mubr.bf16.mxu1 %v3942_v3 }
 0x7dc   : > { %1313 = vmatpush1.bf16.msra.mxu0 %v3743_v22  ;;  %v4389_v22 = vld [vmem:[%s4836_s6 + $0x8] sm:$0x3f] }
 0x7dd   : > { %1314 = vmatprep.subr.bf16.mxu0 %v3942_v3  ;;  %v1365_v26 = vrot.slane %v4389_v22, %v4169_v54 }
 0x7e0   : > { %1315 = vmatpush1.bf16.msra.mxu0 %v3744_v23  ;;  %v1360_v23 = vrot.slane %v4389_v22, %v4161_v52 }
 0x7e1   : > { %1316 = vmatprep.subr.bf16.mxu0 %v3942_v3 }
 0x7e4   : > { %1317 = vmatpush1.bf16.msra.mxu0 %v3745_v24 }
 0x7e5   : > { %1318 = vmatprep.subr.bf16.mxu0 %v3942_v3 }
 0x7e8   : > { %1319 = vmatpush1.bf16.msra.mxu0 %v3746_v25 }
 0x7e9   : > { %3567 = vmatprep.subr.bf16.mxu0 %v3945_v14 }
 0x8ad   : > { %v1053_v42 = vpop.f32.mrb[24].mxu1 }
 0x8ae   : > { %v1054_v43 = vadd.f32 %v1053_v42, %v997_v41  ;;  %v3535_v44 = vpop.f32.mrb[25].mxu1 }
 0x8af   : > { %v1056_v45 = vpop.f32.mrb[26].mxu1 }
 0x8b0   : > { %v4263_v46 = vadd.f32 %v1054_v43, %v4133_v34  ;;  %v3536_v47 = vpop.f32.mrb[27].mxu1  ;;  %v3726_v34 = vld [vmem:[%s4837_s7] ss:$8 sps:$4 sm:$0xff]  }
 0x8b1   : > { %1136 = vmatpush1.bf16.msra.mxu1 %v3726_v34 }
 0x8b2   : > { %v1060_v48 = vsel %vm512_vm2, %v4263_v46, 0.0  ;;  %1137 = vmatprep.subr.bf16.mxu1 %v3731_v59 }
 0x8b3   : > { %1061 = vadd.xlane.f32.xlu1 %v1060_v48 }
 0x8b5   : > { %1138 = vmatpush1.bf16.msra.mxu1 %v3729_v60 }
 0x8b6   : > { %1139 = vmatprep.subr.bf16.mxu1 %v3734_v61  ;;  %v4356_v61 = vsub.s32 5, %v4158_v51 }
 0x8b9   : > { %1140 = vmatpush1.bf16.msra.mxu1 %v3732_v62  ;;  %v1340_v62 = vrot.slane %v4166_v53, %v4356_v61  ;;  %v3749_v53 = vld [vmem:[%s4833_s3 + $0x34] ss:$8 sps:$4 sm:$0xff]  }
 0x8ba   : > { %1421 = vmatprep.subr.bf16.mxu1 %v3749_v53 }
 0x940   : > { %v1062_v49 = vpop.xlane.xlu1 %1061 }
 0x941   : > { %v1063_v50 = vmul.f32 0.020833334, %v1062_v49 }
 0x943   : > { %v1064_v55 = vsub.f32 %v4263_v46, %v1063_v50 }
 0x945   : > { %v1065_v56 = vmul.f32 %v1064_v55, %v1064_v55 }
 0x947   : > { %v1066_v57 = vsel %vm512_vm2, %v1065_v56, 0.0 }
 0x948   : > { %1067 = vadd.xlane.f32.xlu0 %v1066_v57 }
 0x9d5   : > { %v1068_v4 = vpop.xlane.xlu0 %1067 }
 0x9d6   : > { %v1069_v5 = vmul.f32 0.020833334, %v1068_v4 }
 0x9d8   : > { %v1070_v6 = vadd.f32 1e-05, %v1069_v5 }
 0x9da   : > { %3830 = vrsqrt.f32 %v1070_v6 }
 0x9e4   : > { %v3831_v10 = vpop.eup %3830 }
 0x9e5   : > { %v1072_v11 = vmul.f32 %v3831_v10, %v1064_v55 }
 0x9e7   : > { %v1077_v13 = vmul.f32 %v1076_v9, %v1072_v11 }
 0x9e9   : > { %v1082_v15 = vadd.f32 %v1081_v12, %v1077_v13  ;;  %v3752_v13 = vld [vmem:[%s4833_s3 + $0x44] ss:$8 sps:$4 sm:$0xff]  }
 0x9eb   : > { %v1083_v16 = vpack.c.bf16 %v1082_v15, %v1082_v15  ;;  %v3750_v15 = vld [vmem:[%s4833_s3 + $0x40] ss:$8 sps:$4 sm:$0xff]  }
 0x9ed   : > { %3201 = vmatmul.mubr.msk.bf16.vlgmr.msra.gmra.mrb[28].mxu1 %vm512_vm2, %v1083_v16  ;;  %v3755_v16 = vld [vmem:[%s4833_s3 + $0x54] ss:$8 sps:$4 sm:$0xff]  }
 0x9ee   : > { %1453 = vmatprep.mubr.bf16.mxu1 %v3942_v3 }
 0xac0   : > { %v1169_v30 = vpop.f32.mrb[28].mxu1 }
 0xac1   : > { %v1170_v31 = vadd.f32 %v1169_v30, %v1095_v27  ;;  %v1171_v29 = vpop.f32.mrb[29].mxu1 }
 0xac2   : > { %v1172_v32 = vadd.f32 %v1171_v29, %v1099_v28  ;;  %v1173_v33 = vpop.f32.mrb[30].mxu1 }
 0xac3   : > { %v1178_v35 = vmul.f32 0.044715, %v1170_v31  ;;  %v1174_v36 = vpop.f32.mrb[31].mxu1  ;;  %v1176_v50 = vmul.f32 0.5, %v1170_v31 }
 0xac4   : > { %v1179_v37 = vmul.f32 0.044715, %v1172_v32  ;;  %v1177_v56 = vmul.f32 0.5, %v1172_v32 }
 0xac5   : > { %v1180_v38 = vmul.f32 %v1178_v35, %v1170_v31 }
 0xac6   : > { %v1181_v39 = vmul.f32 %v1179_v37, %v1172_v32 }
 0xac7   : > { %v1182_v41 = vmul.f32 %v1180_v38, %v1170_v31 }
 0xac8   : > { %v1183_v42 = vmul.f32 %v1181_v39, %v1172_v32 }
 0xac9   : > { %v1184_v43 = vadd.f32 %v1182_v41, %v1170_v31  ;;  %v3222_v31 = vld [vmem:[%s4834_s4 + $0x2] sm:$0x3] }
 0xaca   : > { %v1185_v44 = vadd.f32 %v1183_v42, %v1172_v32  ;;  %v1381_v29 = vrot.slane %v3222_v31, %v4161_v52 }
 0xacb   : > { %v1186_v45 = vmul.f32 0.7978846, %v1184_v43 }
 0xacc   : > { %v1187_v47 = vmul.f32 0.7978846, %v1185_v44 }
 0xacd   : > { %3832 = vtanh.f32 %v1186_v45 }
 0xace   : > { %3834 = vtanh.f32 %v1187_v47 }
 0xad7   : > { %v3833_v48 = vpop.eup %3832 }
 0xad8   : > { %v3835_v49 = vpop.eup %3834  ;;  %v1190_v55 = vadd.f32 1.0, %v3833_v48 }
 0xad9   : > { %v1191_v57 = vadd.f32 1.0, %v3835_v49 }
 0xada   : > { %v1192_v58 = vmul.f32 %v1190_v55, %v1176_v50 }
 0xadb   : > { %v1193_v34 = vmul.f32 %v1191_v57, %v1177_v56 }
 0xadc   : > { %v1194_v60 = vpack.c.bf16 %v1192_v58, %v1192_v58 }
 0xadd   : > { %v1195_v59 = vpack.c.bf16 %v1193_v34, %v1193_v34 }
 0xadf   : > { %3214 = vmatprep.mubr.msk.bf16.mxu0 %vm1292_vm8, %v1195_v59 }
 0xae0   : > { %1329 = vmatmul.mubr.bf16.vlgmr.msra.gmra.mrb[8].mxu0 %v1194_v60  ;;  %v1385_v60 = vrot.slane %v3222_v31, %v4169_v54 }
 0xae1   : > { %3569 = vmatprep.mubr.msk.bf16.mxu0 %vm3944_vm0, %v3945_v14 }
 0xbb3   : > { %v1330_v63 = vpop.f32.mrb[8].mxu0 }
 0xbb4   : > { %v1336_v0 = vadd.f32 %v1330_v63, %v4263_v46  ;;  %v1332_v1 = vpop.f32.mrb[9].mxu0  ;;  %v3747_v46 = vld [vmem:[%s4833_s3 + $0x30] ss:$8 sps:$4 sm:$0xff]  }
 0xbb5   : > { %v1333_v2 = vpop.f32.mrb[10].mxu0  ;;  %1422 = vmatpush1.bf16.msra.mxu1 %v3747_v46 }
 0xbb6   : > { %v4361_v4 = vadd.f32 %v1340_v62, %v1336_v0  ;;  %v1334_v5 = vpop.f32.mrb[11].mxu0  ;;  %1423 = vmatprep.subr.bf16.mxu1 %v3752_v13 }
 0xbb8   : > { %v1344_v6 = vsel %vm512_vm2, %v4361_v4, 0.0 }
 0xbb9   : > { %1345 = vadd.xlane.f32.xlu1 %v1344_v6  ;;  %1424 = vmatpush1.bf16.msra.mxu1 %v3750_v15 }
 0xbba   : > { %1425 = vmatprep.subr.bf16.mxu1 %v3755_v16 }
 0xbbd   : > { %1426 = vmatpush1.bf16.msra.mxu1 %v3753_v17 }
 0xbbe   : > { %3537 = vmatprep.subr.bf16.mxu1 %v3945_v14 }
 0xc46   : > { %v1346_v9 = vpop.xlane.xlu1 %1345 }
 0xc47   : > { %v1347_v10 = vmul.f32 0.020833334, %v1346_v9 }
 0xc49   : > { %v1348_v51 = vsub.f32 %v4361_v4, %v1347_v10 }
 0xc4b   : > { %v1349_v11 = vmul.f32 %v1348_v51, %v1348_v51 }
 0xc4d   : > { %v1350_v12 = vsel %vm512_vm2, %v1349_v11, 0.0 }
 0xc4e   : > { %1351 = vadd.xlane.f32.xlu0 %v1350_v12 }
 0xcdb   : > { %v1352_v18 = vpop.xlane.xlu0 %1351 }
 0xcdc   : > { %v1353_v20 = vmul.f32 0.020833334, %v1352_v18 }
 0xcde   : > { %v1354_v21 = vadd.f32 1e-05, %v1353_v20 }
 0xce0   : > { %3836 = vrsqrt.f32 %v1354_v21 }
 0xcea   : > { %v3837_v24 = vpop.eup %3836 }
 0xceb   : > { %v1356_v25 = vmul.f32 %v3837_v24, %v1348_v51 }
 0xced   : > { %v1361_v27 = vmul.f32 %v1360_v23, %v1356_v25 }
 0xcef   : > { %v1366_v28 = vadd.f32 %v1365_v26, %v1361_v27 }
 0xcf1   : > { %v1367_v30 = vpack.c.bf16 %v1366_v28, %v1366_v28 }
 0xcf3   : > { %3229 = vmatmul.mubr.msk.bf16.vlgmr.msra.gmra.mrb[32].mxu1 %vm512_vm2, %v1367_v30 }
 0xcf4   : > { %3539 = vmatprep.mubr.msk.bf16.mxu1 %vm3944_vm0, %v3945_v14 }
 0xdc6   : > { %v1455_v32 = vpop.f32.mrb[32].mxu1 }
 0xdc7   : > { %v1456_v33 = vadd.f32 %v1455_v32, %v1381_v29  ;;  %v1457_v35 = vpop.f32.mrb[33].mxu1 }
 0xdc8   : > { %v1459_v36 = vpop.f32.mrb[34].mxu1  ;;  %v1458_v62 = vadd.f32 %v1457_v35, %v1385_v60 }
 0xdc9   : > { %v1460_v37 = vpop.f32.mrb[35].mxu1  ;;  %1466 = vrot.lane.b32.xlu0 %v1456_v33, %s4853_s29  ;;  %1463 = vrot.lane.b32.xlu1 %v1456_v33, %s4852_s28  ;;  %v4404_v38 = vpack.c.bf16 %v1456_v33, %v1456_v33  ;;  %s4866_s28 = smov 112  }
 0xdcd   : > { %1477 = vrot.lane.b32.xlu1 %v4404_v38, %s4862_s17 }
 0xe3b   : > { %v1467_v39 = vpop.permute.xlu0 %1466  ;;  %v1464_v41 = vpop.permute.xlu1 %1463 }
 0xe3c   : > { %v1475_v42 = vpack.c.bf16 %v1467_v39, %v1467_v39  ;;  %v1474_v43 = vpack.c.bf16 %v1464_v41, %v1464_v41 }
 0xe3e   : > { %1575 = vrot.lane.b32.xlu0 %v1475_v42, %s4862_s17  ;;  %1526 = vrot.lane.b32.xlu1 %v1474_v43, %s4862_s17 }
 0xe3f   : > { %v1478_v44 = vpop.permute.xlu1 %1477 }
 0xe40   : > { %v1483_v45 = vsel %vm647_vm3, %v1478_v44, 0 }
 0xe41   : > { %3538 = vmatpush3.bf16.xpose.msra.mxu1 %v1483_v45 }
 0xe42   : > { %3543 = vmatprep.subr.bf16.mxu1 %v3945_v14 }
 0xe48   : > { %3540 = vmatmul.mubr.msk.bf16.vlgmr.msra.gmra.mrb[36].mxu1 %vm647_vm3, %v4404_v38 }
 0xe49   : > { %3545 = vmatprep.mubr.msk.bf16.mxu1 %vm3944_vm0, %v3945_v14 }
 0xeb0   : > { %v1527_v47 = vpop.permute.xlu1 %1526  ;;  %v1576_v49 = vpop.permute.xlu0 %1575 }
 0xeb1   : > { %v1532_v48 = vsel %vm647_vm3, %v1527_v47, 0  ;;  %v1581_v50 = vsel %vm647_vm3, %v1576_v49, 0 }
 0xeb2   : > { %3544 = vmatpush3.bf16.xpose.msra.mxu1 %v1532_v48 }
 0xeb3   : > { %3549 = vmatprep.subr.bf16.mxu1 %v3945_v14 }
 0xeb9   : > { %3546 = vmatmul.mubr.msk.bf16.vlgmr.msra.gmra.mrb[40].mxu1 %vm647_vm3, %v1474_v43 }
 0xeba   : > { %3550 = vmatpush3.bf16.xpose.msra.mxu1 %v1581_v50  ;;  %3551 = vmatprep.mubr.msk.bf16.mxu1 %vm3944_vm0, %v3945_v14 }
 0xebb   : > { %3555 = vmatprep.subr.bf16.mxu1 %v3945_v14 }
 0xec1   : > { %3552 = vmatmul.mubr.msk.bf16.vlgmr.msra.gmra.mrb[44].mxu1 %vm647_vm3, %v1475_v42 }
 0xec2   : > { %3557 = vmatprep.mubr.msk.bf16.mxu1 %vm3944_vm0, %v3945_v14 }
 0xf1b   : > { %v1519_v55 = vpop.f32.mrb[36].mxu1 }
 0xf1c   : > { %v1520_v56 = vadd.f32 %v1519_v55, %v4209_v19  ;;  %v3541_v57 = vpop.f32.mrb[37].mxu1 }
 0xf1d   : > { %v1522_v58 = vpop.f32.mrb[38].mxu1  ;;  %v3756_v57 = vld [vmem:[%s4835_s5 + $0x18] sm:$0xff]  }
 0xf1e   : > { %v3542_v34 = vpop.f32.mrb[39].mxu1  ;;  %v1623_v59 = vsel %vm792_vm5, %v1520_v56, -inf  ;;  %v3757_v58 = vld [vmem:[%s4835_s5 + $0x20] sm:$0xff]  }
 0xf1f   : > { %1624 = vmax.xlane.f32.xlu1 %v1623_v59  ;;  %v3758_v34 = vld [vmem:[%s4835_s5 + $0x28] sm:$0xff]  }
 0xf30   : > { %1470 = vrot.lane.b32.xlu1 %v1458_v62, %s4853_s29 }
 0xf34   : > { %1708 = vrot.lane.b32.xlu1 %v1474_v43, %s4863_s20 }
 0xf8c   : > { %v1568_v63 = vpop.f32.mrb[40].mxu1 }
 0xf8d   : > { %v1569_v0 = vadd.f32 %v1568_v63, %v4209_v19  ;;  %v3547_v1 = vpop.f32.mrb[41].mxu1 }
 0xf8e   : > { %v1571_v2 = vpop.f32.mrb[42].mxu1 }
 0xf8f   : > { %v3548_v5 = vpop.f32.mrb[43].mxu1  ;;  %v1626_v6 = vsel %vm792_vm5, %v1569_v0, -inf }
 0xf90   : > { %1627 = vmax.xlane.f32.xlu0 %v1626_v6 }
 0xf94   : > { %v1617_v9 = vpop.f32.mrb[44].mxu1 }
 0xf95   : > { %v1618_v10 = vadd.f32 %v1617_v9, %v4209_v19  ;;  %v3553_v51 = vpop.f32.mrb[45].mxu1 }
 0xf96   : > { %v1620_v11 = vpop.f32.mrb[46].mxu1 }
 0xf97   : > { %v3554_v12 = vpop.f32.mrb[47].mxu1  ;;  %v1629_v53 = vsel %vm792_vm5, %v1618_v10, -inf }
 0xf98   : > { %1630 = vmax.xlane.f32.xlu0 %v1629_v53 }
 0xfac   : > { %v1625_v46 = vpop.xlane.xlu1 %1624 }
 0xfad   : > { %v1632_v13 = vsub.f32 %v1520_v56, %v1625_v46 }
 0xfaf   : > { %v1635_v15 = vmul.f32 1.442695, %v1632_v13 }
 0xfb0   : > { %v1471_v16 = vpop.permute.xlu1 %1470 }
 0xfb1   : > { %3838 = vpow2.f32 %v1635_v15  ;;  %v1659_v17 = vpack.c.bf16 %v1471_v16, %v1471_v16  ;;  %v1826_v15 = vrot.slane %v4389_v22, %v4258_v40 }
 0xfb3   : > { %1757 = vrot.lane.b32.xlu1 %v1659_v17, %s4863_s20 }
 0xfb4   : > { %v1709_v25 = vpop.permute.xlu1 %1708 }
 0xfb5   : > { %v1714_v48 = vsel %vm835_vm6, %v1709_v25, 0 }
 0xfbb   : > { %v3839_v18 = vpop.eup %3838 }
 0xfbc   : > { %v1641_v20 = vsel %vm792_vm5, %v3839_v18, 0.0 }
 0xfbd   : > { %1642 = vadd.xlane.f32.xlu0 %v1641_v20 }
0x101d   : > { %v1628_v21 = vpop.xlane.xlu0 %1627 }
0x101e   : > { %v1633_v23 = vsub.f32 %v1569_v0, %v1628_v21 }
0x1020   : > { %v1637_v24 = vmul.f32 1.442695, %v1633_v23 }
0x1022   : > { %3840 = vpow2.f32 %v1637_v24 }
0x1025   : > { %v1631_v26 = vpop.xlane.xlu0 %1630  ;;  %v1758_v27 = vpop.permute.xlu1 %1757 }
0x1026   : > { %v1634_v28 = vsub.f32 %v1618_v10, %v1631_v26  ;;  %v1763_v30 = vsel %vm835_vm6, %v1758_v27, 0 }
0x1027   : > { %3568 = vmatpush3.bf16.msra.mxu0 %v1763_v30 }
0x1028   : > { %v1639_v31 = vmul.f32 1.442695, %v1634_v28 }
0x102a   : > { %3842 = vpow2.f32 %v1639_v31  ;;  %v3761_v31 = vld [vmem:[%s4837_s7 + $0x34] ss:$8 sps:$4 sm:$0xff]  }
0x102b   : > { %1966 = vmatprep.subr.bf16.mxu0 %v3761_v31 }
0x102c   : > { %v3841_v29 = vpop.eup %3840 }
0x102d   : > { %v1644_v32 = vsel %vm792_vm5, %v3841_v29, 0.0 }
0x102e   : > { %1645 = vadd.xlane.f32.xlu0 %v1644_v32  ;;  %v3762_v32 = vld [vmem:[%s4837_s7 + $0x40] ss:$8 sps:$4 sm:$0xff]  }
0x1034   : > { %v3843_v33 = vpop.eup %3842 }
0x1035   : > { %v1647_v35 = vsel %vm792_vm5, %v3843_v33, 0.0 }
0x1036   : > { %1648 = vadd.xlane.f32.xlu0 %v1647_v35  ;;  %v3765_v35 = vld [vmem:[%s4837_s7 + $0x50] ss:$8 sps:$4 sm:$0xff]  }
0x104a   : > { %v1643_v36 = vpop.xlane.xlu0 %1642 }
0x104b   : > { %3844 = vrcp.f32 %v1643_v36  ;;  %v3768_v36 = vld [vmem:[%s4839_s9 + $0x60] sm:$0xff]  }
0x104c   : > { %1660 = vrot.lane.b32.xlu0 %v4404_v38, %s4863_s20 }
0x1055   : > { %v3845_v39 = vpop.eup %3844 }
0x1056   : > { %v1653_v42 = vmul.f32 %v3845_v39, %v3839_v18  ;;  %v3770_v39 = vld [vmem:[%s4839_s9 + $0x70] sm:$0xff]  }
0x1058   : > { %v1656_v45 = vpack.c.bf16 %v1653_v42, %v1653_v42 }
0x10bb   : > { %v1646_v37 = vpop.xlane.xlu0 %1645 }
0x10bc   : > { %3846 = vrcp.f32 %v1646_v37  ;;  %v3769_v37 = vld [vmem:[%s4839_s9 + $0x68] sm:$0xff]  }
0x10c3   : > { %v1649_v41 = vpop.xlane.xlu0 %1648 }
0x10c4   : > { %3848 = vrcp.f32 %v1649_v41  ;;  %v3771_v41 = vld [vmem:[%s4839_s9 + $0x78] sm:$0xff]  }
0x10c6   : > { %v3847_v47 = vpop.eup %3846 }
0x10c7   : > { %v1661_v43 = vpop.permute.xlu0 %1660  ;;  %v1654_v49 = vmul.f32 %v3847_v47, %v3841_v29  ;;  %v3764_v29 = vld [vmem:[%s4837_s7 + $0x44] ss:$8 sps:$4 sm:$0xff]  }
0x10c8   : > { %v1666_v44 = vsel %vm835_vm6, %v1661_v43, 0 }
0x10c9   : > { %3556 = vmatpush3.bf16.msra.mxu1 %v1666_v44  ;;  %v1657_v56 = vpack.c.bf16 %v1654_v49, %v1654_v49 }
0x10ca   : > { %3561 = vmatprep.subr.bf16.mxu1 %v3945_v14 }
0x10cc   : > { %3558 = vmatmul.mubr.msk.bf16.vlgmr.msra.gmra.mrb[48].mxu1 %vm792_vm5, %v1656_v45  ;;  %v1905_v45 = vrot.slane %v4389_v22, %v4304_v7 }
0x10cd   : > { %3562 = vmatpush3.bf16.msra.mxu1 %v1714_v48  ;;  %3563 = vmatprep.mubr.msk.bf16.mxu1 %vm3944_vm0, %v3945_v14 }
0x10ce   : > { %v3849_v38 = vpop.eup %3848  ;;  %3573 = vmatprep.subr.bf16.mxu1 %v3945_v14 }
0x10cf   : > { %v1655_v50 = vmul.f32 %v3849_v38, %v3843_v33  ;;  %v3767_v33 = vld [vmem:[%s4837_s7 + $0x54] ss:$8 sps:$4 sm:$0xff]   ;;  %v1910_v38 = vrot.slane %v4389_v22, %v4307_v8 }
0x10d1   : > { %v1658_v55 = vpack.c.bf16 %v1655_v50, %v1655_v50 }
0x10d3   : > { %3570 = vmatmul.mubr.msk.bf16.vlgmr.msra.gmra.mrb[12].mxu0 %vm792_vm5, %v1658_v55 }
0x10d4   : > { %3564 = vmatmul.mubr.msk.bf16.vlgmr.msra.gmra.mrb[52].mxu1 %vm792_vm5, %v1657_v56  ;;  %1998 = vmatprep.mubr.bf16.mxu0 %v3942_v3  ;;  %v3772_v56 = vld [vmem:[%s4839_s9 + $0x80] sm:$0xff]  }
0x10d5   : > { %3579 = vmatprep.mubr.msk.bf16.mxu1 %vm3944_vm0, %v3945_v14  ;;  %3574 = vmatpush3.bf16.msra.mxu1 %v3756_v57  ;;  %v3773_v57 = vld [vmem:[%s4839_s9 + $0x88] sm:$0xff]  }
0x10d6   : > { %3575 = vmatprep.subr.bf16.mxu1 %v3945_v14 }
0x10d9   : > { %3576 = vmatpush3.bf16.msra.mxu1 %v3757_v58  ;;  %v3774_v58 = vld [vmem:[%s4839_s9 + $0x90] sm:$0xff]  }
0x10da   : > { %3577 = vmatprep.subr.bf16.mxu1 %v3945_v14 }
0x10dd   : > { %3578 = vmatpush3.bf16.msra.mxu1 %v3758_v34  ;;  %v3775_v34 = vld [vmem:[%s4839_s9 + $0x98] sm:$0xff]  }
0x10de   : > { %2127 = vmatprep.subr.bf16.mxu1 %v3942_v3 }
0x119f   : > { %v1702_v59 = vpop.f32.mrb[48].mxu1 }
0x11a0   : > { %v3559_v60 = vpop.f32.mrb[49].mxu1 }
0x11a1   : > { %v1705_v62 = vpop.f32.mrb[50].mxu1  ;;  %v3777_v60 = vld [vmem:[%s4839_s9 + $0xa8] sm:$0xff]  }
0x11a2   : > { %v3560_v63 = vpop.f32.mrb[51].mxu1  ;;  %v3778_v62 = vld [vmem:[%s4839_s9 + $0xb0] sm:$0xff]  }
0x11a3   : > { %v3779_v63 = vld [vmem:[%s4839_s9 + $0xb8] sm:$0xff]  }
0x11a6   : > { %v1799_v0 = vpop.f32.mrb[12].mxu0 }
0x11a7   : > { %v1750_v1 = vpop.f32.mrb[52].mxu1  ;;  %v3571_v2 = vpop.f32.mrb[13].mxu0 }
0x11a8   : > { %1806 = vrot.lane.b32.xlu1 %v1750_v1, %s4864_s23  ;;  %v3565_v5 = vpop.f32.mrb[53].mxu1  ;;  %v1802_v6 = vpop.f32.mrb[14].mxu0 }
0x11a9   : > { %v1753_v9 = vpop.f32.mrb[54].mxu1  ;;  %v3572_v10 = vpop.f32.mrb[15].mxu0 }
0x11aa   : > { %v3566_v51 = vpop.f32.mrb[55].mxu1 }
0x11ac   : > { %1810 = vrot.lane.b32.xlu1 %v1799_v0, %s4863_s20  ;;  %v3252_v0 = vld [vmem:[%s4838_s8 + $0x2] sm:$0x3] }
0x11ad   : > { %v1926_v1 = vrot.slane %v3252_v0, %v4161_v52  ;;  %v1930_v2 = vrot.slane %v3252_v0, %v4169_v54 }
0x121a   : > { %v1807_v11 = vpop.permute.xlu1 %1806 }
0x121b   : > { %v1813_v12 = vsel %vm647_vm3, %v1702_v59, %v1807_v11  ;;  %v3776_v59 = vld [vmem:[%s4839_s9 + $0xa0] sm:$0xff]  }
0x121e   : > { %v1811_v53 = vpop.permute.xlu1 %1810 }
0x121f   : > { %v1814_v46 = vsel %vm985_vm7, %v1813_v12, %v1811_v53 }
0x1220   : > { %v1815_v13 = vpack.c.bf16 %v1814_v46, %v1814_v46 }
0x1222   : > { %3580 = vmatmul.mubr.msk.bf16.vlgmr.msra.gmra.mrb[56].mxu1 %vm512_vm2, %v1815_v13 }
0x1223   : > { %2128 = vmatpush1.bf16.msra.mxu1 %v3768_v36 }
0x1224   : > { %2129 = vmatprep.subr.bf16.mxu1 %v3942_v3 }
0x1227   : > { %2130 = vmatpush1.bf16.msra.mxu1 %v3769_v37 }
0x1228   : > { %2131 = vmatprep.subr.bf16.mxu1 %v3942_v3 }
0x122b   : > { %2132 = vmatpush1.bf16.msra.mxu1 %v3770_v39 }
0x122c   : > { %2133 = vmatprep.subr.bf16.mxu1 %v3942_v3 }
0x122f   : > { %2134 = vmatpush1.bf16.msra.mxu1 %v3771_v41 }
0x1230   : > { %2135 = vmatprep.subr.bf16.mxu1 %v3942_v3 }
0x1233   : > { %2136 = vmatpush1.bf16.msra.mxu1 %v3772_v56  ;;  %v3786_v56 = vld [vmem:[%s4833_s3 + $0x80] ss:$8 sps:$4 sm:$0xff]  }
0x1234   : > { %2137 = vmatprep.subr.bf16.mxu1 %v3942_v3 }
0x1237   : > { %2138 = vmatpush1.bf16.msra.mxu1 %v3773_v57 }
0x1238   : > { %2139 = vmatprep.subr.bf16.mxu1 %v3942_v3 }
0x123b   : > { %2140 = vmatpush1.bf16.msra.mxu1 %v3774_v58 }
0x123c   : > { %2141 = vmatprep.subr.bf16.mxu1 %v3942_v3 }
0x123f   : > { %2142 = vmatpush1.bf16.msra.mxu1 %v3775_v34 }
0x1240   : > { %2143 = vmatprep.subr.bf16.mxu1 %v3942_v3 }
0x1243   : > { %2144 = vmatpush1.bf16.msra.mxu1 %v3776_v59  ;;  %v4591_v59 = vld [vmem:[%s4836_s6 + $0x10] sm:$0x3f] }
0x1244   : > { %2145 = vmatprep.subr.bf16.mxu1 %v3942_v3  ;;  %v2196_v0 = vrot.slane %v4591_v59, %v4169_v54 }
0x1247   : > { %2146 = vmatpush1.bf16.msra.mxu1 %v3777_v60  ;;  %v2191_v60 = vrot.slane %v4591_v59, %v4161_v52 }
0x1248   : > { %2147 = vmatprep.subr.bf16.mxu1 %v3942_v3 }
0x124b   : > { %2148 = vmatpush1.bf16.msra.mxu1 %v3778_v62 }
0x124c   : > { %2149 = vmatprep.subr.bf16.mxu1 %v3942_v3 }
0x124f   : > { %2150 = vmatpush1.bf16.msra.mxu1 %v3779_v63 }
0x1250   : > { %3613 = vmatprep.subr.bf16.mxu1 %v3945_v14 }
0x12f5   : > { %v1882_v16 = vpop.f32.mrb[56].mxu1 }
0x12f6   : > { %v1883_v17 = vadd.f32 %v1882_v16, %v1826_v15  ;;  %v3581_v18 = vpop.f32.mrb[57].mxu1 }
0x12f7   : > { %v1885_v20 = vpop.f32.mrb[58].mxu1 }
0x12f8   : > { %v4474_v21 = vadd.f32 %v1883_v17, %v4361_v4  ;;  %v3582_v23 = vpop.f32.mrb[59].mxu1  ;;  %v3759_v4 = vld [vmem:[%s4837_s7 + $0x30] ss:$8 sps:$4 sm:$0xff]  }
0x12f9   : > { %1967 = vmatpush1.bf16.msra.mxu0 %v3759_v4 }
0x12fa   : > { %v1889_v24 = vsel %vm512_vm2, %v4474_v21, 0.0  ;;  %1968 = vmatprep.subr.bf16.mxu0 %v3764_v29 }
0x12fb   : > { %1890 = vadd.xlane.f32.xlu1 %v1889_v24 }
0x12fd   : > { %1969 = vmatpush1.bf16.msra.mxu0 %v3762_v32 }
0x12fe   : > { %1970 = vmatprep.subr.bf16.mxu0 %v3767_v33  ;;  %v2171_v33 = vrot.slane %v4389_v22, %v4356_v61  ;;  %v3782_v22 = vld [vmem:[%s4833_s3 + $0x64] ss:$8 sps:$4 sm:$0xff]  }
0x1301   : > { %1971 = vmatpush1.bf16.msra.mxu0 %v3765_v35 }
0x1302   : > { %2252 = vmatprep.subr.bf16.mxu0 %v3782_v22 }
0x1388   : > { %v1891_v25 = vpop.xlane.xlu1 %1890 }
0x1389   : > { %v1892_v26 = vmul.f32 0.020833334, %v1891_v25 }
0x138b   : > { %v1893_v27 = vsub.f32 %v4474_v21, %v1892_v26 }
0x138d   : > { %v1894_v28 = vmul.f32 %v1893_v27, %v1893_v27 }
0x138f   : > { %v1895_v30 = vsel %vm512_vm2, %v1894_v28, 0.0 }
0x1390   : > { %1896 = vadd.xlane.f32.xlu0 %v1895_v30 }
0x141d   : > { %v1897_v42 = vpop.xlane.xlu0 %1896 }
0x141e   : > { %v1898_v43 = vmul.f32 0.020833334, %v1897_v42 }
0x1420   : > { %v1899_v44 = vadd.f32 1e-05, %v1898_v43 }
0x1422   : > { %3850 = vrsqrt.f32 %v1899_v44 }
0x142c   : > { %v3851_v47 = vpop.eup %3850 }
0x142d   : > { %v1901_v48 = vmul.f32 %v3851_v47, %v1893_v27 }
0x142f   : > { %v1906_v49 = vmul.f32 %v1905_v45, %v1901_v48 }
0x1431   : > { %v1911_v50 = vadd.f32 %v1910_v38, %v1906_v49  ;;  %v3785_v49 = vld [vmem:[%s4833_s3 + $0x74] ss:$8 sps:$4 sm:$0xff]  }
0x1433   : > { %v1912_v55 = vpack.c.bf16 %v1911_v50, %v1911_v50  ;;  %v3783_v50 = vld [vmem:[%s4833_s3 + $0x70] ss:$8 sps:$4 sm:$0xff]  }
0x1435   : > { %3259 = vmatmul.mubr.msk.bf16.vlgmr.msra.gmra.mrb[16].mxu0 %vm512_vm2, %v1912_v55  ;;  %v3788_v55 = vld [vmem:[%s4833_s3 + $0x84] ss:$8 sps:$4 sm:$0xff]  }
0x1436   : > { %2284 = vmatprep.mubr.bf16.mxu0 %v3942_v3 }
0x1508   : > { %v2000_v5 = vpop.f32.mrb[16].mxu0 }
0x1509   : > { %v2001_v6 = vadd.f32 %v2000_v5, %v1926_v1  ;;  %v2002_v9 = vpop.f32.mrb[17].mxu0 }
0x150a   : > { %v2003_v10 = vadd.f32 %v2002_v9, %v1930_v2  ;;  %v2004_v51 = vpop.f32.mrb[18].mxu0 }
0x150b   : > { %v2009_v11 = vmul.f32 0.044715, %v2001_v6  ;;  %v2005_v12 = vpop.f32.mrb[19].mxu0  ;;  %v2007_v26 = vmul.f32 0.5, %v2001_v6 }
0x150c   : > { %v2010_v53 = vmul.f32 0.044715, %v2003_v10  ;;  %v2008_v28 = vmul.f32 0.5, %v2003_v10 }
0x150d   : > { %v2011_v46 = vmul.f32 %v2009_v11, %v2001_v6 }
0x150e   : > { %v2012_v13 = vmul.f32 %v2010_v53, %v2003_v10 }
0x150f   : > { %v2013_v15 = vmul.f32 %v2011_v46, %v2001_v6 }
0x1510   : > { %v2014_v16 = vmul.f32 %v2012_v13, %v2003_v10 }
0x1511   : > { %v2015_v17 = vadd.f32 %v2013_v15, %v2001_v6  ;;  %v3304_v6 = vld [vmem:[%s4834_s4 + $0x4] sm:$0x3] }
0x1512   : > { %v2016_v18 = vadd.f32 %v2014_v16, %v2003_v10  ;;  %v2212_v9 = vrot.slane %v3304_v6, %v4161_v52 }
0x1513   : > { %v2017_v20 = vmul.f32 0.7978846, %v2015_v17 }
0x1514   : > { %v2018_v23 = vmul.f32 0.7978846, %v2016_v18 }
0x1515   : > { %3852 = vtanh.f32 %v2017_v20 }
0x1516   : > { %3854 = vtanh.f32 %v2018_v23 }
0x151f   : > { %v3853_v24 = vpop.eup %3852 }
0x1520   : > { %v3855_v25 = vpop.eup %3854  ;;  %v2021_v27 = vadd.f32 1.0, %v3853_v24 }
0x1521   : > { %v2022_v30 = vadd.f32 1.0, %v3855_v25 }
0x1522   : > { %v2023_v31 = vmul.f32 %v2021_v27, %v2007_v26 }
0x1523   : > { %v2024_v4 = vmul.f32 %v2022_v30, %v2008_v28 }
0x1524   : > { %v2025_v32 = vpack.c.bf16 %v2023_v31, %v2023_v31 }
0x1525   : > { %v2026_v29 = vpack.c.bf16 %v2024_v4, %v2024_v4 }
0x1527   : > { %3296 = vmatprep.mubr.msk.bf16.mxu1 %vm1292_vm8, %v2026_v29 }
0x1528   : > { %2160 = vmatmul.mubr.bf16.vlgmr.msra.gmra.mrb[60].mxu1 %v2025_v32 }
0x1529   : > { %3615 = vmatprep.mubr.msk.bf16.mxu1 %vm3944_vm0, %v3945_v14 }
0x15fb   : > { %v2161_v35 = vpop.f32.mrb[60].mxu1 }
0x15fc   : > { %v2167_v36 = vadd.f32 %v2161_v35, %v4474_v21  ;;  %v2163_v37 = vpop.f32.mrb[61].mxu1  ;;  %v3780_v21 = vld [vmem:[%s4833_s3 + $0x60] ss:$8 sps:$4 sm:$0xff]  }
0x15fd   : > { %v2164_v39 = vpop.f32.mrb[62].mxu1  ;;  %2253 = vmatpush1.bf16.msra.mxu0 %v3780_v21 }
0x15fe   : > { %v4563_v41 = vadd.f32 %v2171_v33, %v2167_v36  ;;  %v2165_v42 = vpop.f32.mrb[63].mxu1  ;;  %2254 = vmatprep.subr.bf16.mxu0 %v3785_v49 }
0x1600   : > { %v2175_v43 = vsel %vm512_vm2, %v4563_v41, 0.0 }
0x1601   : > { %2176 = vadd.xlane.f32.xlu0 %v2175_v43  ;;  %2255 = vmatpush1.bf16.msra.mxu0 %v3783_v50 }
0x1602   : > { %2256 = vmatprep.subr.bf16.mxu0 %v3788_v55 }
0x1605   : > { %2257 = vmatpush1.bf16.msra.mxu0 %v3786_v56 }
0x1606   : > { %3583 = vmatprep.subr.bf16.mxu0 %v3945_v14 }
0x168e   : > { %v2177_v44 = vpop.xlane.xlu0 %2176 }
0x168f   : > { %v2178_v45 = vmul.f32 0.020833334, %v2177_v44 }
0x1691   : > { %v2179_v47 = vsub.f32 %v4563_v41, %v2178_v45 }
0x1693   : > { %v2180_v48 = vmul.f32 %v2179_v47, %v2179_v47 }
0x1695   : > { %v2181_v38 = vsel %vm512_vm2, %v2180_v48, 0.0 }
0x1696   : > { %2182 = vadd.xlane.f32.xlu1 %v2181_v38  ;;  %v2216_v38 = vrot.slane %v3304_v6, %v4169_v54 }
0x1723   : > { %v2183_v57 = vpop.xlane.xlu1 %2182 }
0x1724   : > { %v2184_v58 = vmul.f32 0.020833334, %v2183_v57 }
0x1726   : > { %v2185_v34 = vadd.f32 1e-05, %v2184_v58 }
0x1728   : > { %3856 = vrsqrt.f32 %v2185_v34 }
0x1732   : > { %v3857_v62 = vpop.eup %3856 }
0x1733   : > { %v2187_v63 = vmul.f32 %v3857_v62, %v2179_v47 }
0x1735   : > { %v2192_v1 = vmul.f32 %v2191_v60, %v2187_v63 }
0x1737   : > { %v2197_v2 = vadd.f32 %v2196_v0, %v2192_v1 }
0x1739   : > { %v2198_v5 = vpack.c.bf16 %v2197_v2, %v2197_v2 }
0x173b   : > { %3311 = vmatmul.mubr.msk.bf16.vlgmr.msra.gmra.mrb[20].mxu0 %vm512_vm2, %v2198_v5 }
0x173c   : > { %3585 = vmatprep.mubr.msk.bf16.mxu0 %vm3944_vm0, %v3945_v14 }
0x180e   : > { %v2286_v10 = vpop.f32.mrb[20].mxu0 }
0x180f   : > { %v2287_v51 = vadd.f32 %v2286_v10, %v2212_v9  ;;  %v2288_v11 = vpop.f32.mrb[21].mxu0 }
0x1810   : > { %v2290_v12 = vpop.f32.mrb[22].mxu0  ;;  %v2289_v22 = vadd.f32 %v2288_v11, %v2216_v38 }
0x1811   : > { %v2291_v53 = vpop.f32.mrb[23].mxu0  ;;  %2297 = vrot.lane.b32.xlu1 %v2287_v51, %s4865_s19  ;;  %2294 = vrot.lane.b32.xlu0 %v2287_v51, %s4866_s28  ;;  %v4606_v46 = vpack.c.bf16 %v2287_v51, %v2287_v51 }
0x1815   : > { %2308 = vrot.lane.b32.xlu1 %v4606_v46, %s4862_s17 }
0x1883   : > { %v2298_v13 = vpop.permute.xlu1 %2297  ;;  %v2295_v15 = vpop.permute.xlu0 %2294 }
0x1884   : > { %v2306_v16 = vpack.c.bf16 %v2298_v13, %v2298_v13  ;;  %v2305_v17 = vpack.c.bf16 %v2295_v15, %v2295_v15 }
0x1886   : > { %2357 = vrot.lane.b32.xlu0 %v2305_v17, %s4862_s17  ;;  %2406 = vrot.lane.b32.xlu1 %v2306_v16, %s4862_s17  ;;  %s402_s17 = sand.u32 1, %s3932_s22  }
0x1887   : > { %v2309_v18 = vpop.permute.xlu1 %2308  ;;  %s3174_s0 = sshll.u32 %s402_s17, 3  ;;  %s3098_s30 = scalar_lea.sflag [#allocation3], %s402_s17 }
0x1888   : > { %v2314_v20 = vsel %vm647_vm3, %v2309_v18, 0  ;;  %s404_s29 = scalar_lea.vmem [#allocation2], %s3174_s0 }
0x1889   : > { %3584 = vmatpush3.bf16.xpose.msra.mxu0 %v2314_v20  ;;  %s3111_s26 = sshll.u32 %s404_s29, 4  ;;  %s4785_s26 = int_to_ptr.vmem [resolvable:$true] %s3111_s26 }
0x188a   : > { %3589 = vmatprep.subr.bf16.mxu0 %v3945_v14  ;;  %s3878_s15 = scalar_lea.vmem %s4785_s26, 128  ;;  %p3885_p0 = scmp.lt.s32.totalorder %s4785_s26, %s3883_s18 }
0x188b   : > { %p3879_p11 = scmp.ne.s32.totalorder %s4785_s26, %s3878_s15 }
0x188d   : > { %p3880_p12 = pnand %p3879_p11, %p4057_p5 }
0x188f   : > { %p3881_p13 = pneg %p3880_p12 }
0x1890   : > { %3586 = vmatmul.mubr.msk.bf16.vlgmr.msra.gmra.mrb[24].mxu0 %vm647_vm3, %v4606_v46 }
0x1891   : > { %3591 = vmatprep.mubr.msk.bf16.mxu0 %vm3944_vm0, %v3945_v14 }
0x18f8   : > { %v2358_v23 = vpop.permute.xlu0 %2357  ;;  %v2407_v25 = vpop.permute.xlu1 %2406 }
0x18f9   : > { %v2363_v24 = vsel %vm647_vm3, %v2358_v23, 0  ;;  %v2412_v26 = vsel %vm647_vm3, %v2407_v25, 0 }
0x18fa   : > { %3590 = vmatpush3.bf16.xpose.msra.mxu0 %v2363_v24 }
0x18fb   : > { %3595 = vmatprep.subr.bf16.mxu0 %v3945_v14 }
0x1901   : > { %3592 = vmatmul.mubr.msk.bf16.vlgmr.msra.gmra.mrb[28].mxu0 %vm647_vm3, %v2305_v17 }
0x1902   : > { %3596 = vmatpush3.bf16.xpose.msra.mxu0 %v2412_v26  ;;  %3597 = vmatprep.mubr.msk.bf16.mxu0 %vm3944_vm0, %v3945_v14 }
0x1903   : > { %3601 = vmatprep.subr.bf16.mxu0 %v3945_v14 }
0x1909   : > { %3598 = vmatmul.mubr.msk.bf16.vlgmr.msra.gmra.mrb[32].mxu0 %vm647_vm3, %v2306_v16 }
0x190a   : > { %3603 = vmatprep.mubr.msk.bf16.mxu0 %vm3944_vm0, %v3945_v14 }
0x1963   : > { %v2350_v27 = vpop.f32.mrb[24].mxu0 }
0x1964   : > { %v2351_v28 = vadd.f32 %v2350_v27, %v4209_v19  ;;  %v3587_v30 = vpop.f32.mrb[25].mxu0 }
0x1965   : > { %v2353_v31 = vpop.f32.mrb[26].mxu0  ;;  %v3790_v30 = vld [vmem:[%s4835_s5 + $0x38] sm:$0xff]  }
0x1966   : > { %v3588_v4 = vpop.f32.mrb[27].mxu0  ;;  %v2454_v29 = vsel %vm792_vm5, %v2351_v28, -inf  ;;  %v3791_v31 = vld [vmem:[%s4835_s5 + $0x40] sm:$0xff]  }
0x1967   : > { %2455 = vmax.xlane.f32.xlu0 %v2454_v29 }
0x19d4   : > { %v2399_v32 = vpop.f32.mrb[28].mxu0 }
0x19d5   : > { %v2400_v33 = vadd.f32 %v2399_v32, %v4209_v19  ;;  %v3593_v35 = vpop.f32.mrb[29].mxu0 }
0x19d6   : > { %v2402_v36 = vpop.f32.mrb[30].mxu0 }
0x19d7   : > { %v3594_v37 = vpop.f32.mrb[31].mxu0  ;;  %v2457_v39 = vsel %vm792_vm5, %v2400_v33, -inf }
0x19d8   : > { %2458 = vmax.xlane.f32.xlu1 %v2457_v39 }
0x19dc   : > { %v2448_v42 = vpop.f32.mrb[32].mxu0 }
0x19dd   : > { %v2449_v43 = vadd.f32 %v2448_v42, %v4209_v19  ;;  %v3599_v44 = vpop.f32.mrb[33].mxu0 }
0x19de   : > { %v2451_v45 = vpop.f32.mrb[34].mxu0 }
0x19df   : > { %v3600_v47 = vpop.f32.mrb[35].mxu0  ;;  %v2460_v48 = vsel %vm792_vm5, %v2449_v43, -inf }
0x19e0   : > { %2461 = vmax.xlane.f32.xlu0 %v2460_v48 }
0x19f4   : > { %v2456_v21 = vpop.xlane.xlu0 %2455 }
0x19f5   : > { %v2463_v49 = vsub.f32 %v2351_v28, %v2456_v21  ;;  %v3789_v28 = vld [vmem:[%s4835_s5 + $0x30] sm:$0xff]  }
0x19f6   : > { %2301 = vrot.lane.b32.xlu0 %v2289_v22, %s4865_s19  ;;  %s3884_s19 = scalar_lea.vmem %s3883_s18, 256 }
0x19f7   : > { %v2466_v50 = vmul.f32 1.442695, %v2463_v49  ;;  %v2657_v49 = vrot.slane %v4591_v59, %v4258_v40  ;;  %v3794_v40 = vld [vmem:[%s4837_s7 + $0x64] ss:$8 sps:$4 sm:$0xff]   ;;  %p3886_p1 = scmp.lt.s32.totalorder %s3884_s19, %s3878_s15 }
0x19f9   : > { %3858 = vpow2.f32 %v2466_v50  ;;  %p3887_p2 = por %p3886_p1, %p3885_p0 }
0x19fa   : > { %2539 = vrot.lane.b32.xlu0 %v2305_v17, %s4863_s20 }
0x19fb   : > { %p3888_p3 = pnand %p3887_p2, %p3881_p13 }
0x1a03   : > { %v3859_v55 = vpop.eup %3858 }
0x1a04   : > { %v2472_v19 = vsel %vm792_vm5, %v3859_v55, 0.0 }
0x1a05   : > { %2473 = vadd.xlane.f32.xlu1 %v2472_v19 }
0x1a65   : > { %v2459_v56 = vpop.xlane.xlu1 %2458 }
0x1a66   : > { %v2464_v57 = vsub.f32 %v2400_v33, %v2459_v56 }
0x1a68   : > { %v2468_v58 = vmul.f32 1.442695, %v2464_v57 }
0x1a6a   : > { %3860 = vpow2.f32 %v2468_v58 }
0x1a6d   : > { %v2462_v34 = vpop.xlane.xlu0 %2461 }
0x1a6e   : > { %v2465_v60 = vsub.f32 %v2449_v43, %v2462_v34 }
0x1a70   : > { %v2470_v62 = vmul.f32 1.442695, %v2465_v60 }
0x1a71   : > { %v2302_v63 = vpop.permute.xlu0 %2301 }
0x1a72   : > { %3862 = vpow2.f32 %v2470_v62  ;;  %v2490_v0 = vpack.c.bf16 %v2302_v63, %v2302_v63 }
0x1a74   : > { %v3861_v1 = vpop.eup %3860  ;;  %2588 = vrot.lane.b32.xlu0 %v2490_v0, %s4863_s20 }
0x1a75   : > { %v2475_v2 = vsel %vm792_vm5, %v3861_v1, 0.0  ;;  %v2540_v9 = vpop.permute.xlu0 %2539 }
0x1a76   : > { %2476 = vadd.xlane.f32.xlu1 %v2475_v2  ;;  %v2545_v20 = vsel %vm835_vm6, %v2540_v9, 0  ;;  %v3797_v2 = vld [vmem:[%s4837_s7 + $0x74] ss:$8 sps:$4 sm:$0xff]   ;;  %v3800_v9 = vld [vmem:[%s4837_s7 + $0x84] ss:$8 sps:$4 sm:$0xff]  }
0x1a7c   : > { %v3863_v5 = vpop.eup %3862 }
0x1a7d   : > { %v2478_v6 = vsel %vm792_vm5, %v3863_v5, 0.0 }
0x1a7e   : > { %2479 = vadd.xlane.f32.xlu1 %v2478_v6  ;;  %v3798_v6 = vld [vmem:[%s4837_s7 + $0x80] ss:$8 sps:$4 sm:$0xff]  }
0x1a8f   : > { %2491 = vrot.lane.b32.xlu1 %v4606_v46, %s4863_s20 }
0x1a92   : > { %v2474_v11 = vpop.xlane.xlu1 %2473 }
0x1a93   : > { %3864 = vrcp.f32 %v2474_v11  ;;  %v3803_v11 = vld [vmem:[%s4839_s9 + $0xd0] sm:$0xff]  }
0x1a9d   : > { %v3865_v53 = vpop.eup %3864 }
0x1a9e   : > { %v2484_v15 = vmul.f32 %v3865_v53, %v3859_v55 }
0x1aa0   : > { %v2487_v18 = vpack.c.bf16 %v2484_v15, %v2484_v15 }
0x1ae6   : > { %v2589_v10 = vpop.permute.xlu0 %2588 }
0x1ae7   : > { %v2594_v51 = vsel %vm835_vm6, %v2589_v10, 0  ;;  %v3801_v10 = vld [vmem:[%s4839_s9 + $0xc0] sm:$0xff]  }
0x1ae8   : > { %3614 = vmatpush3.bf16.msra.mxu1 %v2594_v51  ;;  %v3802_v51 = vld [vmem:[%s4839_s9 + $0xc8] sm:$0xff]  }
0x1ae9   : > { %2797 = vmatprep.subr.bf16.mxu1 %v3794_v40 }
0x1b03   : > { %v2477_v12 = vpop.xlane.xlu1 %2476 }
0x1b04   : > { %3866 = vrcp.f32 %v2477_v12  ;;  %v3804_v12 = vld [vmem:[%s4839_s9 + $0xd8] sm:$0xff]  }
0x1b0b   : > { %v2480_v13 = vpop.xlane.xlu1 %2479 }
0x1b0c   : > { %3868 = vrcp.f32 %v2480_v13 }
0x1b0e   : > { %v3867_v46 = vpop.eup %3866 }
0x1b0f   : > { %v2492_v16 = vpop.permute.xlu1 %2491  ;;  %v2485_v24 = vmul.f32 %v3867_v46, %v3861_v1  ;;  %v2741_v46 = vrot.slane %v4591_v59, %v4307_v8  ;;  %v3807_v8 = vld [vmem:[%s4839_s9 + $0xf0] sm:$0xff]  }
0x1b10   : > { %v2497_v17 = vsel %vm835_vm6, %v2492_v16, 0  ;;  %v2736_v16 = vrot.slane %v4591_v59, %v4304_v7  ;;  %v3806_v7 = vld [vmem:[%s4839_s9 + $0xe8] sm:$0xff]  }
0x1b11   : > { %3602 = vmatpush3.bf16.msra.mxu0 %v2497_v17  ;;  %v2488_v27 = vpack.c.bf16 %v2485_v24, %v2485_v24 }
0x1b12   : > { %3607 = vmatprep.subr.bf16.mxu0 %v3945_v14 }
0x1b14   : > { %3604 = vmatmul.mubr.msk.bf16.vlgmr.msra.gmra.mrb[36].mxu0 %vm792_vm5, %v2487_v18 }
0x1b15   : > { %3608 = vmatpush3.bf16.msra.mxu0 %v2545_v20  ;;  %3609 = vmatprep.mubr.msk.bf16.mxu0 %vm3944_vm0, %v3945_v14 }
0x1b16   : > { %v3869_v23 = vpop.eup %3868  ;;  %3619 = vmatprep.subr.bf16.mxu0 %v3945_v14 }
0x1b17   : > { %v2486_v25 = vmul.f32 %v3869_v23, %v3863_v5  ;;  %v3795_v5 = vld [vmem:[%s4837_s7 + $0x70] ss:$8 sps:$4 sm:$0xff]  }
0x1b19   : > { %v2489_v26 = vpack.c.bf16 %v2486_v25, %v2486_v25  ;;  %v3805_v25 = vld [vmem:[%s4839_s9 + $0xe0] sm:$0xff]  }
0x1b1b   : > { %3616 = vmatmul.mubr.msk.bf16.vlgmr.msra.gmra.mrb[64].mxu1 %vm792_vm5, %v2489_v26  ;;  %v3808_v26 = vld [vmem:[%s4839_s9 + $0xf8] sm:$0xff]  }
0x1b1c   : > { %3610 = vmatmul.mubr.msk.bf16.vlgmr.msra.gmra.mrb[40].mxu0 %vm792_vm5, %v2488_v27  ;;  %2829 = vmatprep.mubr.bf16.mxu1 %v3942_v3  ;;  %v3809_v27 = vld [vmem:[%s4839_s9 + $0x100] sm:$0xff]  }
0x1b1d   : > { %3625 = vmatprep.mubr.msk.bf16.mxu0 %vm3944_vm0, %v3945_v14  ;;  %3620 = vmatpush3.bf16.msra.mxu0 %v3789_v28  ;;  %v3810_v28 = vld [vmem:[%s4839_s9 + $0x108] sm:$0xff]  }
0x1b1e   : > { %3621 = vmatprep.subr.bf16.mxu0 %v3945_v14 }
0x1b21   : > { %3622 = vmatpush3.bf16.msra.mxu0 %v3790_v30  ;;  %v3811_v30 = vld [vmem:[%s4839_s9 + $0x110] sm:$0xff]  }
0x1b22   : > { %3623 = vmatprep.subr.bf16.mxu0 %v3945_v14 }
0x1b25   : > { %3624 = vmatpush3.bf16.msra.mxu0 %v3791_v31  ;;  %v3812_v31 = vld [vmem:[%s4839_s9 + $0x118] sm:$0xff]  }
0x1b26   : > { %2958 = vmatprep.subr.bf16.mxu0 %v3942_v3 }
0x1be7   : > { %v2533_v4 = vpop.f32.mrb[36].mxu0 }
0x1be8   : > { %v3605_v29 = vpop.f32.mrb[37].mxu0 }
0x1be9   : > { %v2536_v32 = vpop.f32.mrb[38].mxu0 }
0x1bea   : > { %v3606_v33 = vpop.f32.mrb[39].mxu0 }
0x1bee   : > { %v2630_v35 = vpop.f32.mrb[64].mxu1 }
0x1bef   : > { %v2581_v36 = vpop.f32.mrb[40].mxu0  ;;  %2641 = vrot.lane.b32.xlu1 %v2630_v35, %s4863_s20  ;;  %v3617_v37 = vpop.f32.mrb[65].mxu1 }
0x1bf0   : > { %2637 = vrot.lane.b32.xlu0 %v2581_v36, %s4864_s23  ;;  %v3611_v39 = vpop.f32.mrb[41].mxu0  ;;  %v2633_v42 = vpop.f32.mrb[66].mxu1  ;;  %s4790_s23 = scalar_lea.hbm %s4842_s12, %s3384_s16 }
0x1bf1   : > { %v2584_v43 = vpop.f32.mrb[42].mxu0  ;;  %v3618_v44 = vpop.f32.mrb[67].mxu1 }
0x1bf2   : > { %v3612_v45 = vpop.f32.mrb[43].mxu0 }
0x1c61   : > { %v2642_v48 = vpop.permute.xlu1 %2641 }
0x1c62   : > { %v2638_v47 = vpop.permute.xlu0 %2637 }
0x1c63   : > { %v2644_v38 = vsel %vm647_vm3, %v2533_v4, %v2638_v47  ;;  %v3334_v4 = vld [vmem:[%s4838_s8 + $0x4] sm:$0x3] }
0x1c64   : > { %v2645_v22 = vsel %vm985_vm7, %v2644_v38, %v2642_v48  ;;  %v2757_v29 = vrot.slane %v3334_v4, %v4161_v52  ;;  %v2761_v32 = vrot.slane %v3334_v4, %v4169_v54 }
0x1c65   : > { %v2646_v21 = vpack.c.bf16 %v2645_v22, %v2645_v22 }
0x1c67   : > { %3626 = vmatmul.mubr.msk.bf16.vlgmr.msra.gmra.mrb[44].mxu0 %vm512_vm2, %v2646_v21 }
0x1c68   : > { %2959 = vmatpush1.bf16.msra.mxu0 %v3801_v10 }
0x1c69   : > { %2960 = vmatprep.subr.bf16.mxu0 %v3942_v3 }
0x1c6c   : > { %2961 = vmatpush1.bf16.msra.mxu0 %v3802_v51 }
0x1c6d   : > { %2962 = vmatprep.subr.bf16.mxu0 %v3942_v3 }
0x1c70   : > { %2963 = vmatpush1.bf16.msra.mxu0 %v3803_v11 }
0x1c71   : > { %2964 = vmatprep.subr.bf16.mxu0 %v3942_v3 }
0x1c74   : > { %2965 = vmatpush1.bf16.msra.mxu0 %v3804_v12 }
0x1c75   : > { %2966 = vmatprep.subr.bf16.mxu0 %v3942_v3 }
0x1c78   : > { %2967 = vmatpush1.bf16.msra.mxu0 %v3805_v25 }
0x1c79   : > { %2968 = vmatprep.subr.bf16.mxu0 %v3942_v3 }
0x1c7c   : > { %2969 = vmatpush1.bf16.msra.mxu0 %v3806_v7 }
0x1c7d   : > { %2970 = vmatprep.subr.bf16.mxu0 %v3942_v3 }
0x1c80   : > { %2971 = vmatpush1.bf16.msra.mxu0 %v3807_v8 }
0x1c81   : > { %2972 = vmatprep.subr.bf16.mxu0 %v3942_v3 }
0x1c84   : > { %2973 = vmatpush1.bf16.msra.mxu0 %v3808_v26 }
0x1c85   : > { %2974 = vmatprep.subr.bf16.mxu0 %v3942_v3 }
0x1c88   : > { %2975 = vmatpush1.bf16.msra.mxu0 %v3809_v27 }
0x1c89   : > { %2976 = vmatprep.subr.bf16.mxu0 %v3942_v3 }
0x1c8c   : > { %2977 = vmatpush1.bf16.msra.mxu0 %v3810_v28 }
0x1c8d   : > { %2978 = vmatprep.subr.bf16.mxu0 %v3942_v3 }
0x1c90   : > { %2979 = vmatpush1.bf16.msra.mxu0 %v3811_v30 }
0x1c91   : > { %2980 = vmatprep.subr.bf16.mxu0 %v3942_v3 }
0x1c94   : > { %2981 = vmatpush1.bf16.msra.mxu0 %v3812_v31 }
0x1d3a   : > { %v2713_v50 = vpop.f32.mrb[44].mxu0 }
0x1d3b   : > { %v2714_v55 = vadd.f32 %v2713_v50, %v2657_v49  ;;  %v3627_v19 = vpop.f32.mrb[45].mxu0 }
0x1d3c   : > { %v2716_v56 = vpop.f32.mrb[46].mxu0 }
0x1d3d   : > { %v4676_v57 = vadd.f32 %v2714_v55, %v4563_v41  ;;  %v3628_v58 = vpop.f32.mrb[47].mxu0  ;;  %v3792_v41 = vld [vmem:[%s4837_s7 + $0x60] ss:$8 sps:$4 sm:$0xff]  }
0x1d3e   : > { %2798 = vmatpush1.bf16.msra.mxu1 %v3792_v41 }
0x1d3f   : > { %v2720_v34 = vsel %vm512_vm2, %v4676_v57, 0.0  ;;  %2799 = vmatprep.subr.bf16.mxu1 %v3797_v2 }
0x1d40   : > { %2721 = vadd.xlane.f32.xlu0 %v2720_v34 }
0x1d42   : > { %2800 = vmatpush1.bf16.msra.mxu1 %v3795_v5 }
0x1d43   : > { %2801 = vmatprep.subr.bf16.mxu1 %v3800_v9 }
0x1d46   : > { %2802 = vmatpush1.bf16.msra.mxu1 %v3798_v6 }
0x1d47   : > { %3629 = vmatprep.subr.bf16.mxu1 %v3945_v14 }
0x1dcd   : > { %v2722_v60 = vpop.xlane.xlu0 %2721 }
0x1dce   : > { %v2723_v62 = vmul.f32 0.020833334, %v2722_v60 }
0x1dd0   : > { %v2724_v63 = vsub.f32 %v4676_v57, %v2723_v62 }
0x1dd2   : > { %v2725_v0 = vmul.f32 %v2724_v63, %v2724_v63 }
0x1dd4   : > { %v2726_v1 = vsel %vm512_vm2, %v2725_v0, 0.0 }
0x1dd5   : > { %2727 = vadd.xlane.f32.xlu1 %v2726_v1  ;;  %v3002_v1 = vrot.slane %v4591_v59, %v4356_v61  ;;  %v3813_v61 = vld [vmem:[%s4841_s11] sm:$0xff]   ;;  %v3814_v59 = vld [vmem:[%s4841_s11 + $0x8] sm:$0xff]  }
0x1e62   : > { %v2728_v53 = vpop.xlane.xlu1 %2727 }
0x1e63   : > { %v2729_v13 = vmul.f32 0.020833334, %v2728_v53 }
0x1e65   : > { %v2730_v15 = vadd.f32 1e-05, %v2729_v13 }
0x1e67   : > { %3870 = vrsqrt.f32 %v2730_v15 }
0x1e71   : > { %v3871_v17 = vpop.eup %3870 }
0x1e72   : > { %v2732_v18 = vmul.f32 %v3871_v17, %v2724_v63 }
0x1e74   : > { %v2737_v20 = vmul.f32 %v2736_v16, %v2732_v18  ;;  %v3004_v18 = vld [vmem:[%s4840_s10] sm:$0x3] }
0x1e76   : > { %v2742_v23 = vadd.f32 %v2741_v46, %v2737_v20  ;;  %v3021_v46 = vrot.slane %v3004_v18, %v4161_v52 }
0x1e78   : > { %v2743_v24 = vpack.c.bf16 %v2742_v23, %v2742_v23 }
0x1e7a   : > { %3341 = vmatmul.mubr.msk.bf16.vlgmr.msra.gmra.mrb[68].mxu1 %vm512_vm2, %v2743_v24 }
0x1e7b   : > { %3635 = vmatprep.mubr.msk.bf16.mxu1 %vm3944_vm0, %v3945_v14  ;;  %3630 = vmatpush3.bf16.msra.mxu1 %v3813_v61 }
0x1e7c   : > { %3631 = vmatprep.subr.bf16.mxu1 %v3945_v14 }
0x1e7f   : > { %3632 = vmatpush3.bf16.msra.mxu1 %v3814_v59 }
0x1e80   : > { %3633 = vmatprep.subr.bf16.mxu1 %v3945_v14  ;;  %v3026_v14 = vrot.slane %v3004_v18, %v4169_v54 }
0x1f4d   : > { %v2831_v33 = vpop.f32.mrb[68].mxu1 }
0x1f4e   : > { %v2832_v35 = vadd.f32 %v2831_v33, %v2757_v29  ;;  %v2833_v36 = vpop.f32.mrb[69].mxu1 }
0x1f4f   : > { %v2834_v37 = vadd.f32 %v2833_v36, %v2761_v32  ;;  %v2835_v39 = vpop.f32.mrb[70].mxu1 }
0x1f50   : > { %v2840_v42 = vmul.f32 0.044715, %v2832_v35  ;;  %v2836_v43 = vpop.f32.mrb[71].mxu1  ;;  %v2838_v19 = vmul.f32 0.5, %v2832_v35 }
0x1f51   : > { %v2841_v44 = vmul.f32 0.044715, %v2834_v37  ;;  %v2839_v58 = vmul.f32 0.5, %v2834_v37 }
0x1f52   : > { %v2842_v45 = vmul.f32 %v2840_v42, %v2832_v35 }
0x1f53   : > { %v2843_v47 = vmul.f32 %v2841_v44, %v2834_v37 }
0x1f54   : > { %v2844_v3 = vmul.f32 %v2842_v45, %v2832_v35 }
0x1f55   : > { %v2845_v48 = vmul.f32 %v2843_v47, %v2834_v37 }
0x1f56   : > { %v2846_v38 = vadd.f32 %v2844_v3, %v2832_v35 }
0x1f57   : > { %v2847_v22 = vadd.f32 %v2845_v48, %v2834_v37 }
0x1f58   : > { %v2848_v21 = vmul.f32 0.7978846, %v2846_v38 }
0x1f59   : > { %v2849_v49 = vmul.f32 0.7978846, %v2847_v22 }
0x1f5a   : > { %3872 = vtanh.f32 %v2848_v21 }
0x1f5b   : > { %3874 = vtanh.f32 %v2849_v49 }
0x1f64   : > { %v3873_v50 = vpop.eup %3872 }
0x1f65   : > { %v3875_v55 = vpop.eup %3874  ;;  %v2852_v56 = vadd.f32 1.0, %v3873_v50 }
0x1f66   : > { %v2853_v34 = vadd.f32 1.0, %v3875_v55 }
0x1f67   : > { %v2854_v60 = vmul.f32 %v2852_v56, %v2838_v19 }
0x1f68   : > { %v2855_v62 = vmul.f32 %v2853_v34, %v2839_v58 }
0x1f69   : > { %v2856_v0 = vpack.c.bf16 %v2854_v60, %v2854_v60 }
0x1f6a   : > { %v2857_v63 = vpack.c.bf16 %v2855_v62, %v2855_v62 }
0x1f6c   : > { %3378 = vmatprep.mubr.msk.bf16.mxu0 %vm1292_vm8, %v2857_v63 }
0x1f6d   : > { %2991 = vmatmul.mubr.bf16.vlgmr.msra.gmra.mrb[48].mxu0 %v2856_v0 }
0x2040   : > { %v2992_v40 = vpop.f32.mrb[48].mxu0 }
0x2041   : > { %v2998_v41 = vadd.f32 %v2992_v40, %v4676_v57  ;;  %v2994_v2 = vpop.f32.mrb[49].mxu0  ;;  %v3815_v57 = vld [vmem:[%s4841_s11 + $0x10] sm:$0xff]  }
0x2042   : > { %v2995_v5 = vpop.f32.mrb[50].mxu0  ;;  %3634 = vmatpush3.bf16.msra.mxu1 %v3815_v57 }
0x2043   : > { %v2996_v6 = vpop.f32.mrb[51].mxu0  ;;  %v3003_v9 = vadd.f32 %v3002_v1, %v2998_v41 }
0x2045   : > { %v3005_v10 = vsel %vm512_vm2, %v3003_v9, 0.0 }
0x2046   : > { %3006 = vadd.xlane.f32.xlu0 %v3005_v10 }
0x20d3   : > { %v3007_v51 = vpop.xlane.xlu0 %3006 }
0x20d4   : > { %v3008_v11 = vmul.f32 0.020833334, %v3007_v51 }
0x20d6   : > { %v3009_v12 = vsub.f32 %v3003_v9, %v3008_v11 }
0x20d8   : > { %v3010_v53 = vmul.f32 %v3009_v12, %v3009_v12 }
0x20da   : > { %v3011_v13 = vsel %vm512_vm2, %v3010_v53, 0.0 }
0x20db   : > { %3012 = vadd.xlane.f32.xlu0 %v3011_v13 }
0x2168   : > { %v3013_v15 = vpop.xlane.xlu0 %3012 }
0x2169   : > { %v3014_v16 = vmul.f32 0.020833334, %v3013_v15 }
0x216b   : > { %v3015_v17 = vadd.f32 1e-05, %v3014_v16 }
0x216d   : > { %3876 = vrsqrt.f32 %v3015_v17 }
0x2177   : > { %v3877_v20 = vpop.eup %3876 }
0x2178   : > { %v3017_v23 = vmul.f32 %v3877_v20, %v3009_v12 }
0x217a   : > { %v3022_v24 = vmul.f32 %v3021_v46, %v3017_v23 }
0x217c   : > { %v3027_v25 = vadd.f32 %v3026_v14, %v3022_v24 }
0x217e   : > { %v3028_v7 = vpack.c.bf16 %v3027_v25, %v3027_v25 }
0x2180   : > { %3636 = vmatmul.mubr.msk.bf16.vlgmr.msra.gmra.mrb[72].mxu1 %vm512_vm2, %v3028_v7 }
0x2253   : > { %v3090_v52 = vpop.f32.mrb[72].mxu1 }
0x2254   : > { %3096 = vst [vmem:[%s404_s29] sm:$0xff] %v3090_v52  ;;  %v3637_v54 = vpop.f32.mrb[73].mxu1 }
0x2255   : > { %v3093_v8 = vpop.f32.mrb[74].mxu1 }
0x2256   : > { %3891 = shalt.err (!%p3888_p3)
}
0x2257   : > { %s3892_s28 = scalar_lea.hbm %s4790_s23, 128  ;;  %s3896_s29 = scalar_lea.hbm %s4842_s12, 256 }
0x2258   : > { %p3893_p4 = scmp.ne.s32.totalorder %s4790_s23, %s3892_s28  ;;  %p3897_p9 = scmp.lt.u32.totalorder %s4790_s23, %s4842_s12 }
0x2259   : > { %p3898_p10 = scmp.lt.u32.totalorder %s3896_s29, %s3892_s28  ;;  %p3900_p12 = scmp.lt.u32.totalorder %s3892_s28, %s4790_s23 }
0x225a   : > { %p3894_p7 = pnand %p3893_p4, %p4057_p5 }
0x225b   : > { %p3899_p11 = por %p3898_p10, %p3897_p9 }
0x225c   : > { %p3895_p8 = pneg %p3894_p7 }
0x225d   : > { %p3901_p13 = por %p3900_p12, %p3899_p11 }
0x225f   : > { %p3902_p0 = pnand %p3901_p13, %p3895_p8 }
0x2261   : > { %3905 = shalt.err (!%p3902_p0)
}
0x2262   : > { %3663 = dma.vmem_to_hbm [thread:$0]  (%p4057_p5), %s4785_s26, 128, %s4790_s23, %s3098_s30   ;;  %v3638_v26 = vpop.f32.mrb[75].mxu1 }
0x2263 PF: > { %p3669_p1 = scmp.ge.s32.totalorder %s3940_s24, 2  ;;  %s3123_s20 = sand.u32 1, %s3928_s21  }
0x2264   : > { %s3124_s15 = scalar_lea.sflag [#allocation3], %s3123_s20 }
0x2265   : > { %p3666_p2 = pnand %p3669_p1, %p4061_p6 }
0x2267   : > { %3923 = dma.done.wait (!%p3666_p2), %s3124_s15, 128  }
0x2268   : > { %3925 = vsyncadd (!%p3666_p2), %s3124_s15, 4294967168  ;;  %s4867_s24 = sld [smem:[#allocation6_spill]]  ;;  %s4868_s25 = sld [smem:[#allocation5_spill]] }
0x2269   : > { %s4869_s23 = sld [smem:[#allocation7_spill]]  ;;  %s4870_s21 = smov %s3932_s22 }
0x226e   : > { %p22_p3 = scmp.ge.s32.totalorder %s4867_s24, 4   ;;  %s4871_s22 = smov %s4868_s25 }
0x2270   :  { %24 = sbr.rel (!%p22_p3) target bundleno = 5 (0x5), region = 117 }
0x2277   :  { %3129 = vsyncpa [#allocation3], 1 }
0x2278   :  { %3131 = vsyncpa [#allocation3 + $0x1], 1 }

</bundles_post_ra>
